<compile_context>
chip_gen: v7x
topology: tpu7x:2x2x1
jax: 0.10.0
libtpu: 0.0.40
codegen_flags: <defaults>
</compile_context>

<pallas_src>
import math

import jax
import jax.numpy as jnp
from jax.experimental import pallas as pl
from jax.experimental.pallas import tpu as pltpu


# ---------------------------------------------------------------------------
# Pallas kernel: one (batch, sequence-chunk) tile per grid step.
# ---------------------------------------------------------------------------
def make_mamba2_kernel(Lb, Dm, Di, R, dt_min, dt_max, dt_scale, dot_dtype):
    f32 = jnp.float32

    def kernel(x_ref, w_in_ref, w_dt_ref, w_out_ref, y_ref, fs_ref, state_scr):
        c = pl.program_id(1)

        # init the carried cross-chunk state at the first chunk of each batch element
        @pl.when(c == 0)
        def _():
            state_scr[...] = jnp.zeros_like(state_scr)

        xc = x_ref[0].astype(dot_dtype)                                  # (Lb, Dm)

        # ---- in_proj (MXU, f32 accumulation) --------------------------------
        u = jnp.dot(xc, w_in_ref[...].astype(dot_dtype),
                    preferred_element_type=f32)                          # (Lb, Di)

        # ---- delta = mean( dt_min + (dt_max-dt_min)*dt_scale*sigmoid(u W_dt) )
        dt = jnp.dot(u.astype(dot_dtype), w_dt_ref[...].astype(dot_dtype),
                     preferred_element_type=f32)                         # (Lb, R)
        dt = jax.nn.sigmoid(dt) * dt_scale
        dt = dt * (dt_max - dt_min) + dt_min
        delta = jnp.mean(dt, axis=-1, keepdims=True)                     # (Lb, 1) f32

        # within-chunk inclusive cumsum of delta (tiny triangular matmul; its RHS
        # width is 1 so the MXU cost is negligible next to the Di-wide matmuls)
        row = jax.lax.broadcasted_iota(jnp.int32, (Lb, Lb), 0)
        col = jax.lax.broadcasted_iota(jnp.int32, (Lb, Lb), 1)
        tril_f = (row >= col).astype(f32)
        a_cum = jnp.dot(tril_f, delta, preferred_element_type=f32)       # (Lb, 1)

        e_pos = jnp.exp(a_cum)                                           # (Lb, 1)
        e_neg = jnp.exp(-a_cum)                                          # (Lb, 1)
        a_last = jnp.sum(delta, axis=0, keepdims=True)                   # (1, 1)
        e_last = jnp.exp(a_last)

        # exp(a[l]-a[s]) factored as exp(a[l]) * exp(-a[s]):
        #   y_diag[l] = exp(a[l]) * sum_{s<=l} exp(-a[s]) * u[s]
        z = e_neg * u                                                    # (Lb, Di) f32
        t = jnp.dot(tril_f.astype(dot_dtype), z.astype(dot_dtype),
                    preferred_element_type=f32)                          # (Lb, Di)

        state_prev = state_scr[...]                                      # (1, Di)

        # y_diag + y_off ; cb = sum_n B[n]*C[n] is folded into w_out on the host.
        y = e_pos * (t + state_prev)                                     # (Lb, Di)

        # ---- fused out_proj --------------------------------------------------
        out = jnp.dot(y.astype(dot_dtype), w_out_ref[...].astype(dot_dtype),
                      preferred_element_type=f32)                        # (Lb, Dm)
        y_ref[0] = out.astype(y_ref.dtype)

        # carried state update:
        #   state_new = exp(a_last) * state_prev + sum_s exp(a_last - a[s]) * u[s]
        state_new = e_last * (state_prev + jnp.sum(z, axis=0, keepdims=True))
        state_scr[...] = state_new
        fs_ref[0] = state_new.astype(fs_ref.dtype)   # resident output; last write wins

    return kernel


def _pick_seq_tile(L):
    for t in (256, 128, 64, 32, 16, 8):
        if L % t == 0:
            return min(t, L)
    return L


# ---------------------------------------------------------------------------
# Wrapper: parameter plumbing + pallas_call
# ---------------------------------------------------------------------------
def mamba2_forward(x, params, *, block_size, dt_min=1e-3, dt_max=1e-1,
                   dt_scale=1.0, seq_tile=None):
    w_in, w_dt, w_out = params["w_in"], params["w_dt"], params["w_out"]
    b_p, c_p = params["B"], params["C"]

    Bsz, L, Dm = x.shape
    Di = w_in.shape[1]
    R = w_dt.shape[1]
    N = b_p.shape[0]
    assert L % block_size == 0, "sequence length must be divisible by block_size"
    assert N == Di, "reference code requires d_state == P (== d_inner with d_head=1)"

    if seq_tile is None:
        seq_tile = _pick_seq_tile(L)   # >=128 when possible (lane/MXU density)
    Lb = seq_tile
    assert L % Lb == 0
    C = L // Lb

    dot_dtype = w_in.dtype   # MXU operand dtype (bf16 weights -> bf16 MXU, f32 accum)

    # Fold cb = sum_n B[n]*C[n] into out_proj (valid: B/C are time-invariant and
    # d_state == P, so the SSD einsums factor through this scalar).
    cb = jnp.sum(b_p.astype(jnp.float32) * c_p.astype(jnp.float32))
    w_out_scaled = (w_out.astype(jnp.float32) * cb).astype(w_out.dtype)

    kernel = make_mamba2_kernel(Lb, Dm, Di, R, dt_min, dt_max, dt_scale, dot_dtype)

    # VMEM budget: double-buffered x/y blocks + resident weights + temporaries.
    xsz = jnp.dtype(x.dtype).itemsize
    wsz = jnp.dtype(dot_dtype).itemsize
    est = (2 * Lb * Dm * xsz                      # x blocks
           + 2 * Lb * Dm * xsz                    # y blocks
           + 2 * Di * 4                           # final-state blocks
           + 2 * (Dm * Di + Di * R + Di * Dm) * wsz   # weights
           + Di * 4                               # carried-state scratch
           + 6 * Lb * max(Di, Lb) * 4)            # in-kernel temporaries
    vmem_limit = int(min(max(2 * est, 32 << 20), 56 << 20))

    y, state_p = pl.pallas_call(
        kernel,
        out_shape=(
            jax.ShapeDtypeStruct((Bsz, L, Dm), x.dtype),
            jax.ShapeDtypeStruct((Bsz, 1, Di), jnp.float32),
        ),
        grid=(Bsz, C),
        in_specs=[
            pl.BlockSpec((1, Lb, Dm), lambda b, c: (b, c, 0)),   # x chunk
            pl.BlockSpec((Dm, Di), lambda b, c: (0, 0)),         # W_in^T
            pl.BlockSpec((Di, R), lambda b, c: (0, 0)),          # W_dt^T
            pl.BlockSpec((Di, Dm), lambda b, c: (0, 0)),         # cb * W_out^T
        ],
        out_specs=(
            pl.BlockSpec((1, Lb, Dm), lambda b, c: (b, c, 0)),   # y chunk
            pl.BlockSpec((1, 1, Di), lambda b, c: (b, 0, 0)),    # final carried state
        ),
        scratch_shapes=[pltpu.VMEM((1, Di), jnp.float32)],
        compiler_params=pltpu.CompilerParams(
            dimension_semantics=("parallel", "arbitrary"),
            vmem_limit_bytes=vmem_limit),
    )(x, w_in, w_dt, w_out_scaled)

    # final_state: (B, H=1, P, N) == outer(state_p, B)  (matches torch new_states[:, -1])
    final_state = (state_p[:, :, :, None].astype(jnp.float32)
                   * b_p.astype(jnp.float32)[None, None, None, :])
    return y, final_state


# ---------------------------------------------------------------------------
# Pure-JAX reference (mirrors the PyTorch code einsum-for-einsum) for checking.
# ---------------------------------------------------------------------------
def _segsum_ref(z):
    T = z.shape[-1]
    zc = jnp.cumsum(z, axis=-1)
    ss = zc[..., :, None] - zc[..., None, :]
    mask = jnp.tril(jnp.ones((T, T), dtype=bool), k=0)
    return jnp.where(mask, ss, -jnp.inf)


def reference_forward(x, params, *, block_size, d_head, dt_min, dt_max, dt_scale):
    w_in, w_dt, w_out = params["w_in"], params["w_dt"], params["w_out"]
    Bp, Cp = params["B"], params["C"]
    Bsz, Ltot, _ = x.shape
    u = x @ w_in                                                # (B, L, Di)
    Di = u.shape[-1]
    H = d_head
    P = Di // H
    xh = u.reshape(Bsz, Ltot, H, P)
    dt = xh @ w_dt                                              # (B, L, H, R)
    dt = jax.nn.sigmoid(dt) * dt_scale
    dt = dt * (dt_max - dt_min) + dt_min
    delta = dt.mean(axis=-1)                                    # (B, L, H)

    Lb = block_size
    Cch = Ltot // Lb
    xck = xh.reshape(Bsz, Cch, Lb, H, P)
    d = delta.reshape(Bsz, Cch, Lb, H).transpose(0, 3, 1, 2)    # (B, H, C, Lb)
    A_cumsum = jnp.cumsum(d, axis=-1)
    Lmat = jnp.exp(_segsum_ref(d))                              # (B, H, C, Lb, Lb)
    Ce = jnp.broadcast_to(Cp.reshape(1, 1, 1, 1, P), xck.shape)
    Be = jnp.broadcast_to(Bp.reshape(1, 1, 1, 1, P), xck.shape)
    Y_diag = jnp.einsum("bclhn,bcshn,bhcls,bcshp->bclhp", Ce, Be, Lmat, xck)
    decay_states = jnp.exp(A_cumsum[..., -1:] - A_cumsum)
    states = jnp.einsum("bclhn,bhcl,bclhp->bchpn", Be, decay_states, xck)
    init = jnp.zeros_like(states[:, :1])
    states = jnp.concatenate([init, states], axis=1)
    A_last = jnp.pad(A_cumsum[..., -1], ((0, 0), (0, 0), (1, 0)))
    decay_chunk = jnp.exp(_segsum_ref(A_last))
    new_states = jnp.einsum("bhzc,bchpn->bzhpn", decay_chunk, states)
    states_o, final_state = new_states[:, :-1], new_states[:, -1]
    state_decay_out = jnp.exp(A_cumsum)
    Y_off = jnp.einsum("bclhn,bchpn,bhcl->bclhp", Ce, states_o, state_decay_out)
    Y = (Y_diag + Y_off).reshape(Bsz, Ltot, H * P)
    return Y @ w_out, final_state


if __name__ == "__main__":
    # Small shapes consistent with the module's forward.
    d_model = 32
    expand_factor = 2
    d_inner = expand_factor * d_model        # 64
    d_head = 1                               # H (see constraints at top of file)
    d_state = d_inner                        # N == P required by expand_as
    dt_rank = 8
    block_size = 64                          # module default
    seq_tile = 128                           # kernel sequence tile (>=128 for MXU/lane density)
    dt_min, dt_max, dt_scale = 1e-3, 1e-1, 1.0
    Bsz, L = 2, 256

    key = jax.random.PRNGKey(0)
    ks = jax.random.split(key, 6)
    bound_in = 1.0 / math.sqrt(d_model)
    bound_out = 1.0 / math.sqrt(d_inner)
    params = {
        # stored pre-transposed (in_features, out_features) so kernels do x @ W
        "w_in": jax.random.uniform(ks[0], (d_model, d_inner), jnp.float32,
                                   -bound_in, bound_in),
        "w_dt": 0.1 * jax.random.normal(ks[1], (d_inner, dt_rank), jnp.float32),
        "w_out": jax.random.uniform(ks[2], (d_inner, d_model), jnp.float32,
                                    -bound_out, bound_out),
        "B": 0.1 * jax.random.normal(ks[3], (d_state,), jnp.float32),
        "C": 0.1 * jax.random.normal(ks[4], (d_state,), jnp.float32),
    }
    x = jax.random.normal(ks[5], (Bsz, L, d_model), jnp.float32)

    # --- f32 run, tight (relative) check against the pure-JAX reference ---
    y, final_state = mamba2_forward(x, params, block_size=block_size, seq_tile=seq_tile,
                                    dt_min=dt_min, dt_max=dt_max, dt_scale=dt_scale)
    jax.block_until_ready((y, final_state))

    y_ref, fs_ref = reference_forward(x, params, block_size=block_size, d_head=d_head,
                                      dt_min=dt_min, dt_max=dt_max, dt_scale=dt_scale)
    assert y.shape == (Bsz, L, d_model)
    assert final_state.shape == (Bsz, d_head, d_inner, d_state)
    sy = float(jnp.max(jnp.abs(y_ref))) + 1.0
    ss = float(jnp.max(jnp.abs(fs_ref))) + 1.0
    err_y = float(jnp.max(jnp.abs(y - y_ref))) / sy
    err_s = float(jnp.max(jnp.abs(final_state - fs_ref))) / ss
    assert err_y < 2e-3 and err_s < 2e-3, (err_y, err_s)

    # --- bf16-MXU run (half HBM traffic, full-rate MXU on v6e/v7x); loose check ---
    params_bf16 = {k: v.astype(jnp.bfloat16) for k, v in params.items()}
    y16, fs16 = mamba2_forward(x.astype(jnp.bfloat16), params_bf16,
                               block_size=block_size, seq_tile=seq_tile,
                               dt_min=dt_min, dt_max=dt_max, dt_scale=dt_scale)
    jax.block_until_ready((y16, fs16))
    err16 = float(jnp.max(jnp.abs(y16.astype(jnp.float32) - y_ref))) / sy
    assert err16 < 0.1, err16

    print("KERNEL_OK")
</pallas_src>

<mosaic_0001>
module attributes {stable_mosaic.version = 11 : i64} {
  func.func @kernel(%arg0: i32, %arg1: i32, %arg2: memref<1x128x32xf32, #tpu.memory_space<vmem>>, %arg3: memref<32x64xf32, #tpu.memory_space<vmem>>, %arg4: memref<64x8xf32, #tpu.memory_space<vmem>>, %arg5: memref<64x32xf32, #tpu.memory_space<vmem>>, %arg6: memref<1x128x32xf32, #tpu.memory_space<vmem>>, %arg7: memref<1x1x64xf32, #tpu.memory_space<vmem>>, %arg8: memref<1x64xf32, #tpu.memory_space<vmem>>) attributes {dimension_semantics = [#tpu.dimension_semantics<parallel>, #tpu.dimension_semantics<arbitrary>], iteration_bounds = array<i64: 2, 2>, scalar_prefetch = 0 : i64, scratch_operands = 1 : i64, tpu.core_type = #tpu.core_type<tc>, window_params = [{transform_indices = @transform_0, window_bounds = array<i64: 1, 128, 32>}, {pipeline_mode = #tpu.pipeline_mode<synchronous>, transform_indices = @transform_1, window_bounds = array<i64: 32, 64>}, {pipeline_mode = #tpu.pipeline_mode<synchronous>, transform_indices = @transform_2, window_bounds = array<i64: 64, 8>}, {pipeline_mode = #tpu.pipeline_mode<synchronous>, transform_indices = @transform_3, window_bounds = array<i64: 64, 32>}, {transform_indices = @transform_4, window_bounds = array<i64: 1, 128, 32>}, {transform_indices = @transform_5, window_bounds = array<i64: 1, 1, 64>}]} {
    %c0_i32 = arith.constant 0 : i32
    %0 = arith.cmpi eq, %arg1, %c0_i32 : i32
    %1 = arith.extui %0 : i1 to i32
    %c0_i32_0 = arith.constant 0 : i32
    %2 = arith.cmpi ne, %1, %c0_i32_0 : i32
    scf.if %2 {
      %cst_32 = arith.constant 0.000000e+00 : f32
      %59 = vector.broadcast %cst_32 : f32 to vector<1x64xf32>
      %c0_33 = arith.constant 0 : index
      %c0_34 = arith.constant 0 : index
      %60 = vector.load %arg8[%c0_33, %c0_34] : memref<1x64xf32, #tpu.memory_space<vmem>>, vector<1x64xf32>
      tpu.vector_store %arg8[%c0_33, %c0_34], %59 {strides = array<i32>} : memref<1x64xf32, #tpu.memory_space<vmem>>, vector<1x64xf32>,
    } else {
    }
    %c0 = arith.constant 0 : index
    %c0_1 = arith.constant 0 : index
    %c0_2 = arith.constant 0 : index
    %3 = vector.load %arg2[%c0, %c0_1, %c0_2] : memref<1x128x32xf32, #tpu.memory_space<vmem>>, vector<1x128x32xf32>
    %4 = vector.shape_cast %3 : vector<1x128x32xf32> to vector<128x32xf32>
    %c0_3 = arith.constant 0 : index
    %c0_4 = arith.constant 0 : index
    %5 = vector.load %arg3[%c0_3, %c0_4] : memref<32x64xf32, #tpu.memory_space<vmem>>, vector<32x64xf32>
    %cst = arith.constant dense<0.000000e+00> : vector<128x64xf32>
    %6 = tpu.matmul %4, %5, %cst {dimension_numbers = #tpu.dot_dimension_numbers<[1], [0], [0], [1], [0, 0, 1, 1], [], []>} : vector<128x32xf32>, vector<32x64xf32>, vector<128x64xf32> -> vector<128x64xf32>
    %c0_5 = arith.constant 0 : index
    %c0_6 = arith.constant 0 : index
    %7 = vector.load %arg4[%c0_5, %c0_6] : memref<64x8xf32, #tpu.memory_space<vmem>>, vector<64x8xf32>
    %cst_7 = arith.constant dense<0.000000e+00> : vector<128x8xf32>
    %8 = tpu.matmul %6, %7, %cst_7 {dimension_numbers = #tpu.dot_dimension_numbers<[1], [0], [0], [1], [0, 0, 1, 1], [], []>} : vector<128x64xf32>, vector<64x8xf32>, vector<128x8xf32> -> vector<128x8xf32>
    %9 = arith.negf %8 : vector<128x8xf32>
    %10 = math.exp %9 : vector<128x8xf32>
    %cst_8 = arith.constant 1.000000e+00 : f32
    %11 = vector.broadcast %cst_8 : f32 to vector<128x8xf32>
    %12 = arith.addf %11, %10 : vector<128x8xf32>
    %13 = arith.divf %11, %12 : vector<128x8xf32>
    %cst_9 = arith.constant 1.000000e+00 : f32
    %14 = vector.broadcast %cst_9 : f32 to vector<128x8xf32>
    %15 = arith.mulf %13, %14 : vector<128x8xf32>
    %cst_10 = arith.constant 0.0989999994 : f32
    %16 = vector.broadcast %cst_10 : f32 to vector<128x8xf32>
    %17 = arith.mulf %15, %16 : vector<128x8xf32>
    %cst_11 = arith.constant 1.000000e-03 : f32
    %18 = vector.broadcast %cst_11 : f32 to vector<128x8xf32>
    %19 = arith.addf %17, %18 : vector<128x8xf32>
    %cst_12 = arith.constant dense<0.000000e+00> : vector<128xf32>
    %20 = vector.multi_reduction <add>, %19, %cst_12 [1] : vector<128x8xf32> to vector<128xf32>
    %21 = vector.shape_cast %20 : vector<128xf32> to vector<128x1xf32>
    %cst_13 = arith.constant 8.000000e+00 : f32
    %22 = vector.broadcast %cst_13 : f32 to vector<128x1xf32>
    %23 = arith.divf %21, %22 : vector<128x1xf32>
    %24 = tpu.iota {dimensions = array<i32: 0>} : vector<128x128xi32>
    %25 = tpu.iota {dimensions = array<i32: 1>} : vector<128x128xi32>
    %26 = arith.cmpi sge, %24, %25 : vector<128x128xi32>
    %27 = arith.extui %26 : vector<128x128xi1> to vector<128x128xi32>
    %28 = arith.sitofp %27 : vector<128x128xi32> to vector<128x128xf32>
    %cst_14 = arith.constant dense<0.000000e+00> : vector<128x1xf32>
    %29 = tpu.matmul %28, %23, %cst_14 {dimension_numbers = #tpu.dot_dimension_numbers<[1], [0], [0], [1], [0, 0, 1, 1], [], []>} : vector<128x128xf32>, vector<128x1xf32>, vector<128x1xf32> -> vector<128x1xf32>
    %30 = math.exp %29 : vector<128x1xf32>
    %cst_15 = arith.constant 0.000000e+00 : f32
    %31 = vector.broadcast %cst_15 : f32 to vector<128x1xf32>
    %32 = arith.subf %31, %29 : vector<128x1xf32>
    %33 = math.exp %32 : vector<128x1xf32>
    %cst_16 = arith.constant dense<0.000000e+00> : vector<1xf32>
    %34 = vector.multi_reduction <add>, %23, %cst_16 [0] : vector<128x1xf32> to vector<1xf32>
    %35 = vector.shape_cast %34 : vector<1xf32> to vector<1x1xf32>
    %36 = math.exp %35 : vector<1x1xf32>
    %37 = vector.broadcast %33 : vector<128x1xf32> to vector<128x64xf32>
    %38 = arith.mulf %37, %6 : vector<128x64xf32>
    %cst_17 = arith.constant dense<0.000000e+00> : vector<128x64xf32>
    %39 = tpu.matmul %28, %38, %cst_17 {dimension_numbers = #tpu.dot_dimension_numbers<[1], [0], [0], [1], [0, 0, 1, 1], [], []>} : vector<128x128xf32>, vector<128x64xf32>, vector<128x64xf32> -> vector<128x64xf32>
    %c0_18 = arith.constant 0 : index
    %c0_19 = arith.constant 0 : index
    %40 = vector.load %arg8[%c0_18, %c0_19] : memref<1x64xf32, #tpu.memory_space<vmem>>, vector<1x64xf32>
    %41 = vector.broadcast %40 : vector<1x64xf32> to vector<128x64xf32>
    %42 = arith.addf %39, %41 : vector<128x64xf32>
    %43 = vector.broadcast %30 : vector<128x1xf32> to vector<128x64xf32>
    %44 = arith.mulf %43, %42 : vector<128x64xf32>
    %c0_20 = arith.constant 0 : index
    %c0_21 = arith.constant 0 : index
    %45 = vector.load %arg5[%c0_20, %c0_21] : memref<64x32xf32, #tpu.memory_space<vmem>>, vector<64x32xf32>
    %cst_22 = arith.constant dense<0.000000e+00> : vector<128x32xf32>
    %46 = tpu.matmul %44, %45, %cst_22 {dimension_numbers = #tpu.dot_dimension_numbers<[1], [0], [0], [1], [0, 0, 1, 1], [], []>} : vector<128x64xf32>, vector<64x32xf32>, vector<128x32xf32> -> vector<128x32xf32>
    %c0_23 = arith.constant 0 : index
    %c0_24 = arith.constant 0 : index
    %c0_25 = arith.constant 0 : index
    %47 = vector.load %arg6[%c0_23, %c0_24, %c0_25] : memref<1x128x32xf32, #tpu.memory_space<vmem>>, vector<1x128x32xf32>
    %48 = vector.shape_cast %47 : vector<1x128x32xf32> to vector<128x32xf32>
    %49 = vector.shape_cast %46 : vector<128x32xf32> to vector<1x128x32xf32>
    tpu.vector_store %arg6[%c0_23, %c0_24, %c0_25], %49 {strides = array<i32>} : memref<1x128x32xf32, #tpu.memory_space<vmem>>, vector<1x128x32xf32>,
    %cst_26 = arith.constant dense<0.000000e+00> : vector<64xf32>
    %50 = vector.multi_reduction <add>, %38, %cst_26 [0] : vector<128x64xf32> to vector<64xf32>
    %51 = vector.shape_cast %50 : vector<64xf32> to vector<1x64xf32>
    %52 = arith.addf %40, %51 : vector<1x64xf32>
    %53 = vector.broadcast %36 : vector<1x1xf32> to vector<1x64xf32>
    %54 = arith.mulf %53, %52 : vector<1x64xf32>
    %c0_27 = arith.constant 0 : index
    %c0_28 = arith.constant 0 : index
    %55 = vector.load %arg8[%c0_27, %c0_28] : memref<1x64xf32, #tpu.memory_space<vmem>>, vector<1x64xf32>
    tpu.vector_store %arg8[%c0_27, %c0_28], %54 {strides = array<i32>} : memref<1x64xf32, #tpu.memory_space<vmem>>, vector<1x64xf32>,
    %c0_29 = arith.constant 0 : index
    %c0_30 = arith.constant 0 : index
    %c0_31 = arith.constant 0 : index
    %56 = vector.load %arg7[%c0_29, %c0_30, %c0_31] : memref<1x1x64xf32, #tpu.memory_space<vmem>>, vector<1x1x64xf32>
    %57 = vector.shape_cast %56 : vector<1x1x64xf32> to vector<1x64xf32>
    %58 = vector.shape_cast %54 : vector<1x64xf32> to vector<1x1x64xf32>
    tpu.vector_store %arg7[%c0_29, %c0_30, %c0_31], %58 {strides = array<i32>} : memref<1x1x64xf32, #tpu.memory_space<vmem>>, vector<1x1x64xf32>,
    return
  }
  func.func @transform_0(%arg0: i32, %arg1: i32) -> (i32, i32, i32) {
    %c0_i32 = arith.constant 0 : i32
    %c0_i32_0 = arith.constant 0 : i32
    return %arg0, %arg1, %c0_i32 : i32, i32, i32
  }
  func.func @transform_1(%arg0: i32, %arg1: i32) -> (i32, i32) {
    %c0_i32 = arith.constant 0 : i32
    %c0_i32_0 = arith.constant 0 : i32
    %c0_i32_1 = arith.constant 0 : i32
    return %c0_i32, %c0_i32_0 : i32, i32
  }
  func.func @transform_2(%arg0: i32, %arg1: i32) -> (i32, i32) {
    %c0_i32 = arith.constant 0 : i32
    %c0_i32_0 = arith.constant 0 : i32
    %c0_i32_1 = arith.constant 0 : i32
    return %c0_i32, %c0_i32_0 : i32, i32
  }
  func.func @transform_3(%arg0: i32, %arg1: i32) -> (i32, i32) {
    %c0_i32 = arith.constant 0 : i32
    %c0_i32_0 = arith.constant 0 : i32
    %c0_i32_1 = arith.constant 0 : i32
    return %c0_i32, %c0_i32_0 : i32, i32
  }
  func.func @transform_4(%arg0: i32, %arg1: i32) -> (i32, i32, i32) {
    %c0_i32 = arith.constant 0 : i32
    %c0_i32_0 = arith.constant 0 : i32
    return %arg0, %arg1, %c0_i32 : i32, i32, i32
  }
  func.func @transform_5(%arg0: i32, %arg1: i32) -> (i32, i32, i32) {
    %c0_i32 = arith.constant 0 : i32
    %c0_i32_0 = arith.constant 0 : i32
    %c0_i32_1 = arith.constant 0 : i32
    return %arg0, %c0_i32, %c0_i32_0 : i32, i32, i32
  }
}

</mosaic_0001>

<bundles_post_ra>
// kernel: tpu_custom_call.1
= control target key start
LH: loop header
LB: loop body
LE: loop exit
PB: predicated region body
PF: predicated region fallthrough
CT: control target
= control target key end

     0   :  { %11 = vsyncpa [#allocation4], 0  ;;  %s3561_s0 = inlined_call_operand.vmem [shape: f32[2,256,32], index: 0, kind: input, shape index: {}]   ;;  %s3562_s1 = inlined_call_operand.vmem [shape: f32[32,64], index: 1, kind: input, shape index: {}]   ;;  %s3563_s2 = inlined_call_operand.vmem [shape: f32[64,8], index: 2, kind: input, shape index: {}]   ;;  %s3564_s3 = inlined_call_operand.vmem [shape: f32[64,32], index: 3, kind: input, shape index: {}]   ;;  %s3565_s4 = inlined_call_operand.vmem [shape: f32[2,256,32], index: 4, kind: output, shape index: {0}]   ;;  %s3566_s5 = inlined_call_operand.hbm [shape: f32[2,1,64], index: 5, kind: output, shape index: {1}]  }
   0x1   :  { %13 = vsyncpa [#allocation4 + $0x1], 0  ;;  %s2874_s18 = smov 0   ;;  %s2876_s19 = smov 0  }
   0x2   :  { %s2878_s20 = smov 0   ;;  %s2880_s21 = smov 0  }
   0x3   :  { %s2882_s22 = smov 0   ;;  %s2884_s23 = smov 0  }
   0x4   :  { %s2886_s24 = smov 0   ;;  %s2888_s25 = smov 0  }
   0x5 LB: > { %s1943_s26 = sadd.s32 4294967295, %s2838_s25   ;;  %s1944_s27 = sadd.s32 4294967294, %s2838_s25   ;;  %s2838_s25 = sphi %s2888_s25, %s19_s25   ;;  %s2834_s24 = sphi %s2886_s24, %s3601_s24   ;;  %s2830_s23 = sphi %s2884_s23, %s3600_s23   ;;  %s2826_s22 = sphi %s2882_s22, %s3599_s22   ;;  %s2822_s21 = sphi %s2880_s21, %s3598_s21   ;;  %s2818_s20 = sphi %s2878_s20, %s3597_s20   ;;  %s2814_s19 = sphi %s2876_s19, %s3596_s19   ;;  %s2810_s18 = sphi %s2874_s18, %s3595_s18  }
   0x6   : > { %s28_s28 = sadd.s32 1, %s2830_s23  ;;  %s31_s29 = sadd.s32 1, %s2834_s24 }
   0x7   : > { %p29_p0 = scmp.ge.s32.totalorder %s28_s28, 2  ;;  %p167_p1 = scmp.ne.s32.totalorder %s2818_s20, %s2814_s19 }
   0x8   : > { %p168_p2 = scmp.eq.s32.totalorder %s1943_s26, 3  ;;  %p173_p4 = scmp.ne.s32.totalorder %s2814_s19, %s2810_s18 }
   0x9   : > { %s3603_s28 = smov (%p29_p0, %s28_s28), 0  ;;  %s3605_s29 = smov (!%p29_p0, %s31_s29), %s2834_s24 }
   0xa   : > { %p2923_p3 = por %p168_p2, %p167_p1  ;;  %p33_p5 = scmp.ge.s32.totalorder %s3605_s29, 2 }
   0xb   : > { %p174_p6 = scmp.eq.s32.totalorder %s1944_s27, 3  ;;  %p1947_p7 = scmp.ge.s32.totalorder %s2838_s25, 1 }
   0xc   : > { %p214_p8 = scmp.lt.s32.totalorder %s2838_s25, 5  ;;  %s3607_s29 = smov (%p33_p5, %s3605_s29), 0 }
   0xd   : > { %3573 = sst [smem:[#allocation6_spill]] %s3607_s29  ;;  %p2933_p9 = por %p174_p6, %p173_p4 }
   0xe   : > { %p215_p10 = pnand %p1947_p7, %p214_p8  ;;  %s154_s7 = ssub.s32 %s2834_s24, %s3607_s29 }
   0xf   : > { %s157_s8 = sadd.s32 1, %s2818_s20  ;;  %p155_p11 = scmp.eq.s32.totalorder %s154_s7, 0 }
  0x10   : > { %218 = sbr.rel (%p215_p10) target bundleno = 1548 (0x60c), region = 36 }
  0x11   : > { %s2941_s9 = scalar_select %p155_p11, %s2818_s20, %s157_s8  }
  0x17   : > { %s252_s10 = sand.u32 1, %s2814_s19   ;;  %s1948_s11 = sshll.u32 %s2822_s21, 4 }
  0x18   : > { %p255_p12 = scmp.lt.s32.totalorder %s2826_s22, 1  ;;  %p257_p13 = scmp.lt.s32.totalorder %s1948_s11, 31 }
  0x19   : > { %s2959_s29 = scalar_lea.vmem [#allocation3], %s252_s10  ;;  %p1954_p0 = scmp.ne.s32.totalorder %s2822_s21, 0 }
  0x1a   : > { %s256_s12 = scalar_select %p255_p12, %s2826_s22, 1 }
  0x1b   : > { %s3609_s11 = smov (!%p257_p13, %s1948_s11), 31  ;;  %277 = sbr.rel (%p1954_p0) target bundleno = 34 (0x22), region = 40 }
  0x1c   : > { %s1949_s13 = sshll.u32 %s256_s12, 5  ;;  %vm278_vm0 = vcmask (!%p1954_p0), 516096   ;;  %v2840_v0 = vmov (!%p1954_p0), 0.0  }
  0x1d   : > { %s260_s14 = sadd.s32 %s1949_s13, %s3609_s11  ;;  %279 = vst.msk [vmem:[#allocation2] sm:$0x1] (!%p1954_p0), %vm278_vm0, %v2840_v0 }
  0x1e   : > { %s1950_s15 = sshll.u32 %s260_s14, 3 }
  0x1f   : > { %s2950_s26 = scalar_lea.vmem %s3561_s0, %s1950_s15  ;;  %s2955_s8 = scalar_lea.vmem %s3565_s4, %s1950_s15 }
  0x22 PF: > { %v296_v1 = vld [vmem:[%s3562_s1] sm:$0xff]  ;;  %v297_v2 = vld [vmem:[%s3562_s1 + $0x8] sm:$0xff]  ;;  %v298_v3 = vld [vmem:[%s3562_s1 + $0x10] sm:$0xff]  ;;  %vm3568_vm1 = vcmask 261120   ;;  %vm502_vm2 = vcmask 523264   ;;  %vm824_vm3 = vcmask 64512  }
  0x23   : > { %v2426_v4 = vpack.c.bf16 %v297_v2, %v296_v1  ;;  %v299_v5 = vld [vmem:[%s3562_s1 + $0x18] sm:$0xff]  ;;  %v280_v6 = vld [vmem:[%s2950_s26] sm:$0xff]  ;;  %v495_v9 = vld [vmem:[%s3563_s2 + $0x8] sm:$0xff]  ;;  %s2067_s27 = sshll.u32 %s2826_s22, 4  ;;  %s1834_s7 = sshll.u32 %s2959_s29, 4  ;;  %s1835_s7 = int_to_ptr.vmem [resolvable:$true] %s1834_s7 }
  0x24   : > { %v2430_v7 = vpack.c.bf16 %v299_v5, %v298_v3  ;;  %2210 = vmatprep.mubr.msk.f32.mxu0 %vm3568_vm1, %v280_v6  ;;  %v494_v8 = vld [vmem:[%s3563_s2] sm:$0xff]  ;;  %v496_v10 = vld [vmem:[%s3563_s2 + $0x10] sm:$0xff]  ;;  %v497_v11 = vld [vmem:[%s3563_s2 + $0x18] sm:$0xff]  ;;  %s3480_s13 = scalar_lea.hbm %s3566_s5, %s2067_s27  ;;  %s1818_s14 = scalar_lea.sflag [#allocation4], %s252_s10 }
  0x25   : > { %2427 = vmatprep.subr.bf16.mxu0 %v2426_v4  ;;  %v281_v12 = vld [vmem:[%s2950_s26 + $0x8] sm:$0xff]  ;;  %v2434_v13 = vpack.c.bf16 %v495_v9, %v494_v8  ;;  %v2438_v14 = vpack.c.bf16 %v497_v11, %v496_v10  ;;  %v282_v15 = vld [vmem:[%s2950_s26 + $0x10] sm:$0xff]  ;;  %v498_v16 = vld [vmem:[%s3563_s2 + $0x20] sm:$0xff]  ;;  %s2843_s15 = smov [#allocation3]  }
  0x26   : > { %2429 = vmatpush3.bf16.msra.mxu0 %v2426_v4  ;;  %v499_v17 = vld [vmem:[%s3563_s2 + $0x28] sm:$0xff]  ;;  %v283_v18 = vld [vmem:[%s2950_s26 + $0x18] sm:$0xff]  ;;  %v284_v20 = vld [vmem:[%s2950_s26 + $0x20] sm:$0xff]  ;;  %s2748_s16 = sshll.u32 %s2843_s15, 4  ;;  %s2749_s16 = int_to_ptr.vmem [resolvable:$false] %s2748_s16 }
  0x27   : > { %2431 = vmatprep.subr.bf16.mxu0 %v2430_v7  ;;  %2435 = vmatprep.subr.bf16.mxu1 %v2434_v13  ;;  %v2442_v19 = vpack.c.bf16 %v499_v17, %v498_v16  ;;  %v500_v21 = vld [vmem:[%s3563_s2 + $0x30] sm:$0xff]  ;;  %v501_v22 = vld [vmem:[%s3563_s2 + $0x38] sm:$0xff]  ;;  %v285_v23 = vld [vmem:[%s2950_s26 + $0x28] sm:$0xff]  ;;  %s2750_s21 = scalar_lea.vmem %s2749_s16, 32  ;;  %p2751_p5 = scmp.lt.s32.totalorder %s1835_s7, %s2749_s16 }
  0x28   : > { %2437 = vmatpush3.bf16.msra.mxu1 %v2434_v13  ;;  %v2446_v24 = vpack.c.bf16 %v501_v22, %v500_v21  ;;  %v286_v25 = vld [vmem:[%s2950_s26 + $0x30] sm:$0xff]  ;;  %v287_v26 = vld [vmem:[%s2950_s26 + $0x38] sm:$0xff]  ;;  %v288_v27 = vld [vmem:[%s2950_s26 + $0x40] sm:$0xff] }
  0x29   : > { %2439 = vmatprep.subr.bf16.mxu1 %v2438_v14  ;;  %v289_v28 = vld [vmem:[%s2950_s26 + $0x48] sm:$0xff]  ;;  %v290_v29 = vld [vmem:[%s2950_s26 + $0x50] sm:$0xff]  ;;  %v291_v30 = vld [vmem:[%s2950_s26 + $0x58] sm:$0xff] }
  0x2a   : > { %2433 = vmatpush3.bf16.msra.mxu0 %v2430_v7  ;;  %v292_v31 = vld [vmem:[%s2950_s26 + $0x60] sm:$0xff]  ;;  %v293_v32 = vld [vmem:[%s2950_s26 + $0x68] sm:$0xff]  ;;  %v294_v33 = vld [vmem:[%s2950_s26 + $0x70] sm:$0xff] }
  0x2b   : > { %v295_v34 = vld [vmem:[%s2950_s26 + $0x78] sm:$0xff]  ;;  %s2744_s26 = scalar_lea.vmem %s1835_s7, 16 }
  0x2c   : > { %2441 = vmatpush3.bf16.msra.mxu1 %v2438_v14  ;;  %p2745_p1 = scmp.ne.s32.totalorder %s1835_s7, %s2744_s26  ;;  %p2752_p6 = scmp.lt.s32.totalorder %s2750_s21, %s2744_s26 }
  0x2d   : > { %2211 = vmatmul.mubr.msk.f32.vlgmr.msra.gmra.mrb[0].mxu0 %vm3568_vm1, %v281_v12  ;;  %2443 = vmatprep.subr.bf16.mxu1 %v2442_v19 }
  0x2e   : > { %2213 = vmatprep.mubr.msk.f32.mxu0 %vm3568_vm1, %v282_v15  ;;  %p2746_p2 = pnand %p2745_p1, %p2923_p3  ;;  %p2753_p7 = por %p2752_p6, %p2751_p5 }
  0x30   : > { %2445 = vmatpush3.bf16.msra.mxu1 %v2442_v19  ;;  %p2747_p4 = pneg %p2746_p2 }
  0x31   : > { %2214 = vmatmul.mubr.msk.f32.gmra.mrb[2].mxu0 %vm3568_vm1, %v283_v18  ;;  %2447 = vmatprep.subr.bf16.mxu1 %v2446_v24 }
  0x32   : > { %2216 = vmatprep.mubr.msk.f32.mxu0 %vm3568_vm1, %v284_v20  ;;  %p2754_p8 = pnand %p2753_p7, %p2747_p4 }
  0x34   : > { %2449 = vmatpush3.bf16.msra.mxu1 %v2446_v24 }
  0x35   : > { %2217 = vmatmul.mubr.msk.f32.gmra.mrb[4].mxu0 %vm3568_vm1, %v285_v23 }
  0x36   : > { %2219 = vmatprep.mubr.msk.f32.mxu0 %vm3568_vm1, %v286_v25 }
  0x39   : > { %2220 = vmatmul.mubr.msk.f32.gmra.mrb[6].mxu0 %vm3568_vm1, %v287_v26 }
  0x3a   : > { %2222 = vmatprep.mubr.msk.f32.mxu0 %vm3568_vm1, %v288_v27 }
  0x3d   : > { %2223 = vmatmul.mubr.msk.f32.gmra.mrb[8].mxu0 %vm3568_vm1, %v289_v28 }
  0x3e   : > { %2225 = vmatprep.mubr.msk.f32.mxu0 %vm3568_vm1, %v290_v29 }
  0x41   : > { %2226 = vmatmul.mubr.msk.f32.gmra.mrb[10].mxu0 %vm3568_vm1, %v291_v30 }
  0x42   : > { %2228 = vmatprep.mubr.msk.f32.mxu0 %vm3568_vm1, %v292_v31 }
  0x45   : > { %2229 = vmatmul.mubr.msk.f32.gmra.mrb[12].mxu0 %vm3568_vm1, %v293_v32 }
  0x46   : > { %2231 = vmatprep.mubr.msk.f32.mxu0 %vm3568_vm1, %v294_v33 }
  0x49   : > { %2232 = vmatmul.mubr.msk.f32.gmra.mrb[14].mxu0 %vm3568_vm1, %v295_v34 }
 0x100   : > { %v3030_v35 = vpop.f32.mrb[0].mxu0 }
 0x101   : > { %v3032_v36 = vpop.f32.mrb[1].mxu0 }
 0x102   : > { %2250 = vmatprep.mubr.msk.f32.mxu1 %vm502_vm2, %v3032_v36 }
 0x103   : > { %2251 = vmatmul.mubr.msk.f32.vlgmr.msra.gmra.mrb[0].mxu1 %vm502_vm2, %v3030_v35 }
 0x104   : > { %v3038_v37 = vpop.f32.mrb[2].mxu0 }
 0x105   : > { %v3040_v38 = vpop.f32.mrb[3].mxu0 }
 0x106   : > { %2253 = vmatprep.mubr.msk.f32.mxu1 %vm502_vm2, %v3040_v38 }
 0x107   : > { %2254 = vmatmul.mubr.msk.f32.gmra.mrb[2].mxu1 %vm502_vm2, %v3038_v37 }
 0x108   : > { %v3046_v39 = vpop.f32.mrb[4].mxu0 }
 0x109   : > { %v3048_v40 = vpop.f32.mrb[5].mxu0 }
 0x10a   : > { %2256 = vmatprep.mubr.msk.f32.mxu1 %vm502_vm2, %v3048_v40 }
 0x10b   : > { %2257 = vmatmul.mubr.msk.f32.gmra.mrb[4].mxu1 %vm502_vm2, %v3046_v39 }
 0x10c   : > { %v3054_v41 = vpop.f32.mrb[6].mxu0 }
 0x10d   : > { %v3056_v42 = vpop.f32.mrb[7].mxu0 }
 0x10e   : > { %2259 = vmatprep.mubr.msk.f32.mxu1 %vm502_vm2, %v3056_v42 }
 0x10f   : > { %2260 = vmatmul.mubr.msk.f32.gmra.mrb[6].mxu1 %vm502_vm2, %v3054_v41 }
 0x110   : > { %v3062_v43 = vpop.f32.mrb[8].mxu0 }
 0x111   : > { %v3064_v44 = vpop.f32.mrb[9].mxu0 }
 0x112   : > { %2262 = vmatprep.mubr.msk.f32.mxu1 %vm502_vm2, %v3064_v44 }
 0x113   : > { %2263 = vmatmul.mubr.msk.f32.gmra.mrb[8].mxu1 %vm502_vm2, %v3062_v43 }
 0x114   : > { %v3070_v45 = vpop.f32.mrb[10].mxu0 }
 0x115   : > { %v3072_v46 = vpop.f32.mrb[11].mxu0 }
 0x116   : > { %2265 = vmatprep.mubr.msk.f32.mxu1 %vm502_vm2, %v3072_v46 }
 0x117   : > { %2266 = vmatmul.mubr.msk.f32.gmra.mrb[10].mxu1 %vm502_vm2, %v3070_v45 }
 0x118   : > { %v3078_v47 = vpop.f32.mrb[12].mxu0 }
 0x119   : > { %v3080_v48 = vpop.f32.mrb[13].mxu0 }
 0x11a   : > { %2268 = vmatprep.mubr.msk.f32.mxu1 %vm502_vm2, %v3080_v48 }
 0x11b   : > { %2269 = vmatmul.mubr.msk.f32.gmra.mrb[12].mxu1 %vm502_vm2, %v3078_v47 }
 0x11c   : > { %v3086_v49 = vpop.f32.mrb[14].mxu0 }
 0x11d   : > { %v3088_v50 = vpop.f32.mrb[15].mxu0 }
 0x11e   : > { %2271 = vmatprep.mubr.msk.f32.mxu1 %vm502_vm2, %v3088_v50 }
 0x11f   : > { %2272 = vmatmul.mubr.msk.f32.gmra.mrb[14].mxu1 %vm502_vm2, %v3086_v49 }
 0x1d6   : > { %v2252_v51 = vpop.f32.mrb[0].mxu1 }
 0x1d7   : > { %v1988_v52 = vmul.f32 -1.442695, %v2252_v51  ;;  %v617_v53 = vpop.f32.mrb[1].mxu1 }
 0x1d8   : > { %v1987_v54 = vmul.f32 -1.442695, %v617_v53 }
 0x1d9   : > { %2614 = vpow2.f32 %v1988_v52 }
 0x1da   : > { %2616 = vpow2.f32 %v1987_v54  ;;  %v2255_v55 = vpop.f32.mrb[2].mxu1 }
 0x1db   : > { %v1990_v56 = vmul.f32 -1.442695, %v2255_v55  ;;  %v627_v57 = vpop.f32.mrb[3].mxu1 }
 0x1dc   : > { %v1989_v58 = vmul.f32 -1.442695, %v627_v57 }
 0x1dd   : > { %2618 = vpow2.f32 %v1990_v56 }
 0x1de   : > { %2620 = vpow2.f32 %v1989_v58  ;;  %v2258_v59 = vpop.f32.mrb[4].mxu1 }
 0x1df   : > { %v1992_v60 = vmul.f32 -1.442695, %v2258_v59  ;;  %v637_v61 = vpop.f32.mrb[5].mxu1 }
 0x1e0   : > { %v1991_v62 = vmul.f32 -1.442695, %v637_v61 }
 0x1e1   : > { %2622 = vpow2.f32 %v1992_v60 }
 0x1e2   : > { %2624 = vpow2.f32 %v1991_v62  ;;  %v2261_v63 = vpop.f32.mrb[6].mxu1 }
 0x1e3   : > { %v2615_v0 = vpop.eup %2614  ;;  %v1994_v1 = vmul.f32 -1.442695, %v2261_v63  ;;  %v647_v2 = vpop.f32.mrb[7].mxu1 }
 0x1e4   : > { %v2617_v3 = vpop.eup %2616  ;;  %v745_v4 = vadd.f32 1.0, %v2615_v0  ;;  %v1993_v5 = vmul.f32 -1.442695, %v647_v2 }
 0x1e5   : > { %v744_v6 = vadd.f32 1.0, %v2617_v3  ;;  %2626 = vpow2.f32 %v1994_v1 }
 0x1e6   : > { %2628 = vrcp.f32 %v745_v4  ;;  %v2264_v7 = vpop.f32.mrb[8].mxu1 }
 0x1e7   : > { %v2619_v8 = vpop.eup %2618  ;;  %2630 = vrcp.f32 %v744_v6  ;;  %v1996_v9 = vmul.f32 -1.442695, %v2264_v7  ;;  %v657_v10 = vpop.f32.mrb[9].mxu1 }
 0x1e8   : > { %v2621_v11 = vpop.eup %2620  ;;  %v747_v12 = vadd.f32 1.0, %v2619_v8  ;;  %2632 = vpow2.f32 %v1993_v5  ;;  %v1995_v13 = vmul.f32 -1.442695, %v657_v10 }
 0x1e9   : > { %v746_v14 = vadd.f32 1.0, %v2621_v11  ;;  %2634 = vpow2.f32 %v1996_v9 }
 0x1ea   : > { %2636 = vrcp.f32 %v747_v12  ;;  %v2267_v15 = vpop.f32.mrb[10].mxu1 }
 0x1eb   : > { %v2623_v16 = vpop.eup %2622  ;;  %2638 = vrcp.f32 %v746_v14  ;;  %v1998_v17 = vmul.f32 -1.442695, %v2267_v15  ;;  %v667_v18 = vpop.f32.mrb[11].mxu1 }
 0x1ec   : > { %v2625_v19 = vpop.eup %2624  ;;  %v749_v20 = vadd.f32 1.0, %v2623_v16  ;;  %2640 = vpow2.f32 %v1995_v13  ;;  %v1997_v21 = vmul.f32 -1.442695, %v667_v18 }
 0x1ed   : > { %v748_v22 = vadd.f32 1.0, %v2625_v19  ;;  %2642 = vpow2.f32 %v1998_v17 }
 0x1ee   : > { %2644 = vrcp.f32 %v749_v20  ;;  %v2270_v23 = vpop.f32.mrb[12].mxu1 }
 0x1ef   : > { %v2627_v24 = vpop.eup %2626  ;;  %2646 = vrcp.f32 %v748_v22  ;;  %v2000_v25 = vmul.f32 -1.442695, %v2270_v23  ;;  %v677_v26 = vpop.f32.mrb[13].mxu1 }
 0x1f0   : > { %v2629_v27 = vpop.eup %2628  ;;  %v751_v28 = vadd.f32 1.0, %v2627_v24  ;;  %2648 = vpow2.f32 %v1997_v21  ;;  %v1999_v29 = vmul.f32 -1.442695, %v677_v26 }
 0x1f1   : > { %v2631_v30 = vpop.eup %2630  ;;  %2650 = vpow2.f32 %v2000_v25  ;;  %v793_v34 = vmul.f32 0.099, %v2629_v27 }
 0x1f2   : > { %v2633_v31 = vpop.eup %2632  ;;  %2652 = vrcp.f32 %v751_v28  ;;  %v2273_v32 = vpop.f32.mrb[14].mxu1  ;;  %v792_v33 = vmul.f32 0.099, %v2631_v30 }
 0x1f3   : > { %v2635_v51 = vpop.eup %2634  ;;  %v750_v52 = vadd.f32 1.0, %v2633_v31  ;;  %2654 = vpow2.f32 %v1999_v29  ;;  %v2002_v53 = vmul.f32 -1.442695, %v2273_v32  ;;  %v687_v54 = vpop.f32.mrb[15].mxu1  ;;  %v809_v63 = vadd.f32 0.001, %v793_v34 }
 0x1f4   : > { %v2637_v55 = vpop.eup %2636  ;;  %v753_v56 = vadd.f32 1.0, %v2635_v51  ;;  %v2001_v57 = vmul.f32 -1.442695, %v687_v54  ;;  %v808_v58 = vadd.f32 0.001, %v792_v33 }
 0x1f5   : > { %v2639_v59 = vpop.eup %2638  ;;  %2656 = vrcp.f32 %v750_v52  ;;  %v795_v60 = vmul.f32 0.099, %v2637_v55  ;;  %v828_v11 = vsel %vm824_vm3, %v809_v63, 0.0 }
 0x1f6   : > { %v2641_v61 = vpop.eup %2640  ;;  %2658 = vrcp.f32 %v753_v56  ;;  %v825_v62 = vsel %vm824_vm3, %v808_v58, 0.0  ;;  %v794_v0 = vmul.f32 0.099, %v2639_v59 }
 0x1f7   : > { %v2643_v1 = vpop.eup %2642  ;;  %v752_v2 = vadd.f32 1.0, %v2641_v61  ;;  %2660 = vpow2.f32 %v2002_v53  ;;  %826 = vadd.xlane.f32.xlu0 %v825_v62  ;;  %v811_v3 = vadd.f32 0.001, %v795_v60 }
 0x1f8   : > { %v2645_v4 = vpop.eup %2644  ;;  %v755_v5 = vadd.f32 1.0, %v2643_v1  ;;  %2662 = vpow2.f32 %v2001_v57  ;;  %v810_v8 = vadd.f32 0.001, %v794_v0 }
 0x1f9   : > { %v2647_v6 = vpop.eup %2646  ;;  %2664 = vrcp.f32 %v752_v2  ;;  %v834_v7 = vsel %vm824_vm3, %v811_v3, 0.0  ;;  %v797_v9 = vmul.f32 0.099, %v2645_v4 }
 0x1fa   : > { %v2649_v10 = vpop.eup %2648  ;;  %2666 = vrcp.f32 %v755_v5  ;;  %835 = vadd.xlane.f32.xlu1 %v834_v7  ;;  %v796_v12 = vmul.f32 0.099, %v2647_v6  ;;  %v831_v19 = vsel %vm824_vm3, %v810_v8, 0.0 }
 0x1fb   : > { %v2651_v13 = vpop.eup %2650  ;;  %v754_v14 = vadd.f32 1.0, %v2649_v10  ;;  %829 = vadd.xlane.f32.xlu0 %v828_v11  ;;  %v813_v20 = vadd.f32 0.001, %v797_v9 }
 0x1fc   : > { %v2653_v15 = vpop.eup %2652  ;;  %v757_v16 = vadd.f32 1.0, %v2651_v13  ;;  %v812_v17 = vadd.f32 0.001, %v796_v12 }
 0x1fd   : > { %v2655_v18 = vpop.eup %2654  ;;  %2668 = vrcp.f32 %v754_v14  ;;  %v799_v21 = vmul.f32 0.099, %v2653_v15  ;;  %v840_v28 = vsel %vm824_vm3, %v813_v20, 0.0 }
 0x1fe   : > { %2670 = vrcp.f32 %v757_v16  ;;  %v756_v22 = vadd.f32 1.0, %v2655_v18  ;;  %832 = vadd.xlane.f32.xlu1 %v831_v19  ;;  %v837_v23 = vsel %vm824_vm3, %v812_v17, 0.0  ;;  %v890_v19 = vlaneseq }
 0x1ff   : > { %v2657_v24 = vpop.eup %2656  ;;  %838 = vadd.xlane.f32.xlu0 %v837_v23  ;;  %v815_v29 = vadd.f32 0.001, %v799_v21 }
 0x200   : > { %v2659_v25 = vpop.eup %2658  ;;  %2672 = vrcp.f32 %v756_v22  ;;  %v798_v26 = vmul.f32 0.099, %v2657_v24  ;;  %v3110_v20 = vshrl.u32 %v890_v19, 7  ;;  %v3112_v21 = vand.u32 127, %v890_v19 }
 0x201   : > { %v2661_v27 = vpop.eup %2660  ;;  %v801_v30 = vmul.f32 0.099, %v2659_v25  ;;  %v846_v55 = vsel %vm824_vm3, %v815_v29, 0.0  ;;  %v3569_v22 = vmov 1.0  }
 0x202   : > { %v2663_v31 = vpop.eup %2662  ;;  %v759_v32 = vadd.f32 1.0, %v2661_v27  ;;  %841 = vadd.xlane.f32.xlu1 %v840_v28  ;;  %v814_v33 = vadd.f32 0.001, %v798_v26  ;;  %3575 = vst [vmem:[#allocation7_spill] sm:$0xff] %v3110_v20  ;;  %vm909_vm4 = vcmp.ge.s32.totalorder %v3110_v20, %v3112_v21 }
 0x203   : > { %v2665_v34 = vpop.eup %2664  ;;  %v758_v51 = vadd.f32 1.0, %v2663_v31  ;;  %v817_v56 = vadd.f32 0.001, %v801_v30  ;;  %2306 = vmatprep.mubr.msk.f32.mxu0 %vm909_vm4, %v3569_v22  ;;  %2362 = vmatprep.mubr.msk.f32.mxu1 %vm909_vm4, %v3569_v22 }
 0x204   : > { %v2667_v52 = vpop.eup %2666  ;;  %2674 = vrcp.f32 %v759_v32  ;;  %v843_v53 = vsel %vm824_vm3, %v814_v33, 0.0  ;;  %v800_v54 = vmul.f32 0.099, %v2665_v34 }
 0x205   : > { %2676 = vrcp.f32 %v758_v51  ;;  %844 = vadd.xlane.f32.xlu0 %v843_v53  ;;  %v803_v57 = vmul.f32 0.099, %v2667_v52  ;;  %v852_v63 = vsel %vm824_vm3, %v817_v56, 0.0 }
 0x206   : > { %847 = vadd.xlane.f32.xlu1 %v846_v55  ;;  %v816_v58 = vadd.f32 0.001, %v800_v54 }
 0x207   : > { %v2669_v59 = vpop.eup %2668  ;;  %v819_v0 = vadd.f32 0.001, %v803_v57 }
 0x208   : > { %v2671_v60 = vpop.eup %2670  ;;  %v849_v61 = vsel %vm824_vm3, %v816_v58, 0.0  ;;  %v802_v62 = vmul.f32 0.099, %v2669_v59 }
 0x209   : > { %850 = vadd.xlane.f32.xlu0 %v849_v61  ;;  %v805_v1 = vmul.f32 0.099, %v2671_v60  ;;  %v858_v6 = vsel %vm824_vm3, %v819_v0, 0.0 }
 0x20a   : > { %v2673_v2 = vpop.eup %2672  ;;  %853 = vadd.xlane.f32.xlu1 %v852_v63  ;;  %v818_v3 = vadd.f32 0.001, %v802_v62 }
 0x20b   : > { %v804_v4 = vmul.f32 0.099, %v2673_v2  ;;  %v821_v8 = vadd.f32 0.001, %v805_v1 }
 0x20c   : > { %v855_v5 = vsel %vm824_vm3, %v818_v3, 0.0 }
 0x20d   : > { %856 = vadd.xlane.f32.xlu0 %v855_v5  ;;  %v820_v7 = vadd.f32 0.001, %v804_v4  ;;  %v864_v14 = vsel %vm824_vm3, %v821_v8, 0.0 }
 0x20e   : > { %v2675_v9 = vpop.eup %2674  ;;  %859 = vadd.xlane.f32.xlu1 %v858_v6 }
 0x20f   : > { %v2677_v10 = vpop.eup %2676  ;;  %v861_v11 = vsel %vm824_vm3, %v820_v7, 0.0  ;;  %v807_v12 = vmul.f32 0.099, %v2675_v9 }
 0x210   : > { %v806_v13 = vmul.f32 0.099, %v2677_v10 }
 0x211   : > { %862 = vadd.xlane.f32.xlu0 %v861_v11  ;;  %v823_v15 = vadd.f32 0.001, %v807_v12 }
 0x212   : > { %865 = vadd.xlane.f32.xlu1 %v864_v14  ;;  %v822_v16 = vadd.f32 0.001, %v806_v13 }
 0x213   : > { %v870_v18 = vsel %vm824_vm3, %v823_v15, 0.0 }
 0x214   : > { %v867_v17 = vsel %vm824_vm3, %v822_v16, 0.0 }
 0x215   : > { %868 = vadd.xlane.f32.xlu0 %v867_v17 }
 0x216   : > { %871 = vadd.xlane.f32.xlu1 %v870_v18 }
 0x284   : > { %v827_v23 = vpop.xlane.xlu0 %826 }
 0x285   : > { %v874_v26 = vmul.f32 0.125, %v827_v23 }
 0x287   : > { %v836_v24 = vpop.xlane.xlu1 %835 }
 0x288   : > { %v830_v25 = vpop.xlane.xlu0 %829  ;;  %v877_v31 = vmul.f32 0.125, %v836_v24 }
 0x289   : > { %v875_v27 = vmul.f32 0.125, %v830_v25 }
 0x28b   : > { %v2450_v28 = vpack.c.bf16 %v875_v27, %v874_v26  ;;  %v1182_v29 = vadd.f32 %v875_v27, %v874_v26  ;;  %v833_v30 = vpop.xlane.xlu1 %832 }
 0x28c   : > { %v876_v32 = vmul.f32 0.125, %v833_v30  ;;  %v839_v33 = vpop.xlane.xlu0 %838 }
 0x28d   : > { %2451 = vmatprep.subr.bf16.mxu0 %v2450_v28  ;;  %v878_v54 = vmul.f32 0.125, %v839_v33  ;;  %v3122_v33 = vadd.s32 16, %v3110_v20 }
 0x28e   : > { %v2454_v34 = vpack.c.bf16 %v877_v31, %v876_v32  ;;  %v1183_v51 = vadd.f32 %v1182_v29, %v876_v32  ;;  %2453 = vmatpush3.bf16.msra.mxu0 %v2450_v28  ;;  %v3119_v32 = vadd.s32 8, %v3110_v20 }
 0x28f   : > { %v842_v52 = vpop.xlane.xlu1 %841  ;;  %vm911_vm6 = vcmp.ge.s32.totalorder %v3122_v33, %v3112_v21  ;;  %v1301_v33 = vld [vmem:[#allocation2] sm:$0x1] }
 0x290   : > { %v1184_v53 = vadd.f32 %v1183_v51, %v877_v31  ;;  %v879_v55 = vmul.f32 0.125, %v842_v52  ;;  %2455 = vmatprep.subr.bf16.mxu0 %v2454_v34  ;;  %vm910_vm5 = vcmp.ge.s32.totalorder %v3119_v32, %v3112_v21  ;;  %v3129_v51 = vadd.s32 24, %v3110_v20 }
 0x291   : > { %v3134_v52 = vadd.s32 32, %v3110_v20 }
 0x292   : > { %v1185_v56 = vadd.f32 %v1184_v53, %v878_v54  ;;  %v2458_v57 = vpack.c.bf16 %v879_v55, %v878_v54  ;;  %v845_v58 = vpop.xlane.xlu0 %844  ;;  %2457 = vmatpush3.bf16.msra.mxu0 %v2454_v34  ;;  %vm912_vm7 = vcmp.ge.s32.totalorder %v3129_v51, %v3112_v21  ;;  %v3147_v53 = vadd.s32 40, %v3110_v20 }
 0x293   : > { %v848_v59 = vpop.xlane.xlu1 %847  ;;  %v880_v61 = vmul.f32 0.125, %v845_v58  ;;  %vm913_vm8 = vcmp.ge.s32.totalorder %v3134_v52, %v3112_v21  ;;  %v3152_v54 = vadd.s32 48, %v3110_v20  ;;  %v3188_v58 = vadd.s32 80, %v3110_v20 }
 0x294   : > { %v1186_v60 = vadd.f32 %v1185_v56, %v879_v55  ;;  %v881_v62 = vmul.f32 0.125, %v848_v59  ;;  %2459 = vmatprep.subr.bf16.mxu0 %v2458_v57  ;;  %vm914_vm9 = vcmp.ge.s32.totalorder %v3147_v53, %v3112_v21  ;;  %v3165_v55 = vadd.s32 56, %v3110_v20 }
 0x295   : > { %vm915_vm10 = vcmp.ge.s32.totalorder %v3152_v54, %v3112_v21  ;;  %v3170_v56 = vadd.s32 64, %v3110_v20  ;;  %v3201_v59 = vadd.s32 88, %v3110_v20  ;;  %vm919_vm14 = vcmp.ge.s32.totalorder %v3188_v58, %v3112_v21  ;;  %v1555_v54 = vld [vmem:[%s3564_s3 + $0x30] sm:$0xff] }
 0x296   : > { %v1187_v63 = vadd.f32 %v1186_v60, %v880_v61  ;;  %v2462_v0 = vpack.c.bf16 %v881_v62, %v880_v61  ;;  %v851_v1 = vpop.xlane.xlu0 %850  ;;  %2461 = vmatpush3.bf16.msra.mxu0 %v2458_v57  ;;  %vm916_vm11 = vcmp.ge.s32.totalorder %v3165_v55, %v3112_v21  ;;  %v3183_v57 = vadd.s32 72, %v3110_v20  ;;  %v1556_v55 = vld [vmem:[%s3564_s3 + $0x38] sm:$0xff] }
 0x297   : > { %v854_v2 = vpop.xlane.xlu1 %853  ;;  %v882_v4 = vmul.f32 0.125, %v851_v1  ;;  %vm917_vm12 = vcmp.ge.s32.totalorder %v3170_v56, %v3112_v21  ;;  %v3206_v60 = vadd.s32 96, %v3110_v20  ;;  %vm920_vm15 = vcmp.ge.s32.totalorder %v3201_v59, %v3112_v21 }
 0x298   : > { %v1188_v3 = vadd.f32 %v1187_v63, %v881_v62  ;;  %v883_v5 = vmul.f32 0.125, %v854_v2  ;;  %2463 = vmatprep.subr.bf16.mxu0 %v2462_v0  ;;  %vm918_vm13 = vcmp.ge.s32.totalorder %v3183_v57, %v3112_v21  ;;  %v3219_v61 = vadd.s32 104, %v3110_v20 }
 0x299   : > { %vm921_vm0 = vcmp.ge.s32.totalorder %v3206_v60, %v3112_v21  ;;  %v3224_v62 = vadd.s32 112, %v3110_v20  ;;  %v3237_v63 = vadd.s32 120, %v3110_v20  ;;  %v2526_v56 = vpack.c.bf16 %v1556_v55, %v1555_v54 }
 0x29a   : > { %v1189_v6 = vadd.f32 %v1188_v3, %v882_v4  ;;  %v2466_v7 = vpack.c.bf16 %v883_v5, %v882_v4  ;;  %v857_v8 = vpop.xlane.xlu0 %856  ;;  %2465 = vmatpush3.bf16.msra.mxu0 %v2462_v0  ;;  %vm922_vm3 = vcmp.ge.s32.totalorder %v3219_v61, %v3112_v21  ;;  %v2842_v0 = vmov 0   ;;  %v3577_v61 = vld [vmem:[#allocation7_spill] sm:$0xff] }
 0x29b   : > { %v860_v9 = vpop.xlane.xlu1 %859  ;;  %v884_v11 = vmul.f32 0.125, %v857_v8  ;;  %vm923_vm4 = vcmp.ge.s32.totalorder %v3224_v62, %v3112_v21  ;;  %vm924_vm1 = vcmp.ge.s32.totalorder %v3237_v63, %v3112_v21  ;;  %2613 = vset.pattern.permute.xlu1 %v2842_v0  ;;  %2612 = vset.pattern.permute.xlu0 %v2842_v0  ;;  %v1305_v21 = vsub.s32 0, %v3577_v61 }
 0x29c   : > { %v1190_v10 = vadd.f32 %v1189_v6, %v883_v5  ;;  %v885_v12 = vmul.f32 0.125, %v860_v9  ;;  %2467 = vmatprep.subr.bf16.mxu0 %v2466_v7 }
 0x29e   : > { %v1191_v13 = vadd.f32 %v1190_v10, %v884_v11  ;;  %v2470_v14 = vpack.c.bf16 %v885_v12, %v884_v11  ;;  %v863_v15 = vpop.xlane.xlu0 %862  ;;  %2469 = vmatpush3.bf16.msra.mxu0 %v2466_v7 }
 0x29f   : > { %v866_v16 = vpop.xlane.xlu1 %865  ;;  %v886_v18 = vmul.f32 0.125, %v863_v15 }
 0x2a0   : > { %v1192_v17 = vadd.f32 %v1191_v13, %v885_v12  ;;  %v887_v19 = vmul.f32 0.125, %v866_v16  ;;  %2471 = vmatprep.subr.bf16.mxu0 %v2470_v14 }
 0x2a2   : > { %v1193_v23 = vadd.f32 %v1192_v17, %v886_v18  ;;  %v2474_v24 = vpack.c.bf16 %v887_v19, %v886_v18  ;;  %v869_v25 = vpop.xlane.xlu0 %868  ;;  %2473 = vmatpush3.bf16.msra.mxu0 %v2470_v14 }
 0x2a3   : > { %v872_v26 = vpop.xlane.xlu1 %871  ;;  %v888_v28 = vmul.f32 0.125, %v869_v25 }
 0x2a4   : > { %v1194_v27 = vadd.f32 %v1193_v23, %v887_v19  ;;  %v889_v29 = vmul.f32 0.125, %v872_v26  ;;  %2475 = vmatprep.subr.bf16.mxu0 %v2474_v24 }
 0x2a6   : > { %v1195_v30 = vadd.f32 %v1194_v27, %v888_v28  ;;  %v2478_v31 = vpack.c.bf16 %v889_v29, %v888_v28  ;;  %2477 = vmatpush3.bf16.msra.mxu0 %v2474_v24 }
 0x2a8   : > { %v3124_v34 = vadd.f32 %v1195_v30, %v889_v29  ;;  %2479 = vmatprep.subr.bf16.mxu0 %v2478_v31 }
 0x2aa   : > { %2481 = vmatpush3.bf16.msra.mxu0 %v2478_v31 }
 0x2ad   : > { %2307 = vmatmul.mubr.msk.f32.vlgmr.msra.gmra.mrb[16].mxu0 %vm910_vm5, %v3569_v22 }
 0x2ae   : > { %2309 = vmatprep.mubr.msk.f32.mxu0 %vm911_vm6, %v3569_v22 }
 0x2b1   : > { %2310 = vmatmul.mubr.msk.f32.gmra.mrb[18].mxu0 %vm912_vm7, %v3569_v22 }
 0x2b2   : > { %2312 = vmatprep.mubr.msk.f32.mxu0 %vm913_vm8, %v3569_v22 }
 0x2b5   : > { %2313 = vmatmul.mubr.msk.f32.gmra.mrb[20].mxu0 %vm914_vm9, %v3569_v22 }
 0x2b6   : > { %2315 = vmatprep.mubr.msk.f32.mxu0 %vm915_vm10, %v3569_v22 }
 0x2b9   : > { %2316 = vmatmul.mubr.msk.f32.gmra.mrb[22].mxu0 %vm916_vm11, %v3569_v22 }
 0x2ba   : > { %2318 = vmatprep.mubr.msk.f32.mxu0 %vm917_vm12, %v3569_v22 }
 0x2bd   : > { %2319 = vmatmul.mubr.msk.f32.gmra.mrb[24].mxu0 %vm918_vm13, %v3569_v22 }
 0x2be   : > { %2321 = vmatprep.mubr.msk.f32.mxu0 %vm919_vm14, %v3569_v22 }
 0x2c1   : > { %2322 = vmatmul.mubr.msk.f32.gmra.mrb[26].mxu0 %vm920_vm15, %v3569_v22 }
 0x2c2   : > { %2324 = vmatprep.mubr.msk.f32.mxu0 %vm921_vm0, %v3569_v22 }
 0x2c5   : > { %2325 = vmatmul.mubr.msk.f32.gmra.mrb[28].mxu0 %vm922_vm3, %v3569_v22 }
 0x2c6   : > { %2327 = vmatprep.mubr.msk.f32.mxu0 %vm923_vm4, %v3569_v22 }
 0x2c9   : > { %2328 = vmatmul.mubr.msk.f32.gmra.mrb[30].mxu0 %vm924_vm1, %v3569_v22 }
 0x380   : > { %v3255_v1 = vpop.f32.mrb[16].mxu0 }
 0x381   : > { %v1135_v2 = vsub.f32 0.0, %v3255_v1  ;;  %v3258_v3 = vpop.f32.mrb[17].mxu0 }
 0x382   : > { %v1134_v4 = vsub.f32 0.0, %v3258_v3 }
 0x383   : > { %v1152_v5 = vmul.f32 1.442695, %v1135_v2 }
 0x384   : > { %v1150_v6 = vmul.f32 1.442695, %v1134_v4  ;;  %v3261_v7 = vpop.f32.mrb[18].mxu0 }
 0x385   : > { %2678 = vpow2.f32 %v1152_v5  ;;  %v1137_v8 = vsub.f32 0.0, %v3261_v7  ;;  %v3264_v9 = vpop.f32.mrb[19].mxu0 }
 0x386   : > { %2680 = vpow2.f32 %v1150_v6  ;;  %v1136_v10 = vsub.f32 0.0, %v3264_v9 }
 0x387   : > { %v1156_v11 = vmul.f32 1.442695, %v1137_v8 }
 0x388   : > { %v3267_v12 = vpop.f32.mrb[20].mxu0  ;;  %v1154_v13 = vmul.f32 1.442695, %v1136_v10 }
 0x389   : > { %2682 = vpow2.f32 %v1156_v11  ;;  %v1139_v14 = vsub.f32 0.0, %v3267_v12  ;;  %v3270_v15 = vpop.f32.mrb[21].mxu0 }
 0x38a   : > { %v1138_v17 = vsub.f32 0.0, %v3270_v15  ;;  %2684 = vpow2.f32 %v1154_v13 }
 0x38b   : > { %v1160_v16 = vmul.f32 1.442695, %v1139_v14 }
 0x38c   : > { %v3273_v18 = vpop.f32.mrb[22].mxu0  ;;  %v1158_v26 = vmul.f32 1.442695, %v1138_v17 }
 0x38d   : > { %v3275_v19 = vpop.f32.mrb[23].mxu0  ;;  %2686 = vpow2.f32 %v1160_v16  ;;  %v1141_v24 = vsub.f32 0.0, %v3273_v18 }
 0x38e   : > { %2688 = vpow2.f32 %v1158_v26  ;;  %v1140_v2 = vsub.f32 0.0, %v3275_v19 }
 0x38f   : > { %v2679_v23 = vpop.eup %2678  ;;  %v1164_v31 = vmul.f32 1.442695, %v1141_v24 }
 0x390   : > { %v2681_v25 = vpop.eup %2680  ;;  %1212 = vperm.xlu1 %2613, %v2679_v23   ;;  %v3278_v27 = vpop.f32.mrb[24].mxu0  ;;  %v1162_v13 = vmul.f32 1.442695, %v1140_v2 }
 0x391   : > { %v1143_v28 = vsub.f32 0.0, %v3278_v27  ;;  %1207 = vperm.xlu0 %2612, %v2681_v25   ;;  %v3281_v29 = vpop.f32.mrb[25].mxu0 }
 0x392   : > { %v1142_v10 = vsub.f32 0.0, %v3281_v29 }
 0x393   : > { %v2683_v30 = vpop.eup %2682  ;;  %v1168_v0 = vmul.f32 1.442695, %v1143_v28 }
 0x394   : > { %1222 = vperm.xlu1 %2613, %v2683_v30   ;;  %v2323_v4 = vpop.f32.mrb[26].mxu0  ;;  %v2685_v8 = vpop.eup %2684  ;;  %v1166_v24 = vmul.f32 1.442695, %v1142_v10  ;;  %v1104_v10 = vmul.f32 1.442695, %v3255_v1 }
 0x395   : > { %2690 = vpow2.f32 %v1168_v0  ;;  %v1145_v5 = vsub.f32 0.0, %v2323_v4  ;;  %v1073_v6 = vpop.f32.mrb[27].mxu0 }
 0x396   : > { %2692 = vpow2.f32 %v1164_v31  ;;  %v1144_v25 = vsub.f32 0.0, %v1073_v6 }
 0x397   : > { %v1172_v11 = vmul.f32 1.442695, %v1145_v5  ;;  %v2687_v16 = vpop.eup %2686 }
 0x398   : > { %1217 = vperm.xlu1 %2613, %v2685_v8   ;;  %v3285_v14 = vpop.f32.mrb[28].mxu0  ;;  %v2689_v0 = vpop.eup %2688  ;;  %v1170_v5 = vmul.f32 1.442695, %v1144_v25 }
 0x399   : > { %2694 = vpow2.f32 %v1172_v11  ;;  %v1147_v17 = vsub.f32 0.0, %v3285_v14  ;;  %v1083_v23 = vpop.f32.mrb[29].mxu0 }
 0x39a   : > { %2696 = vpow2.f32 %v1162_v13  ;;  %v1146_v8 = vsub.f32 0.0, %v1083_v23 }
 0x39b   : > { %v1176_v26 = vmul.f32 1.442695, %v1147_v17 }
 0x39c   : > { %1232 = vperm.xlu1 %2613, %v2687_v16   ;;  %v3288_v28 = vpop.f32.mrb[30].mxu0  ;;  %v1174_v16 = vmul.f32 1.442695, %v1146_v8 }
 0x39d   : > { %2698 = vpow2.f32 %v1176_v26  ;;  %v1149_v30 = vsub.f32 0.0, %v3288_v28  ;;  %v1093_v31 = vpop.f32.mrb[31].mxu0  ;;  %v1108_v26 = vmul.f32 1.442695, %v3261_v7  ;;  %v1106_v7 = vmul.f32 1.442695, %v3264_v9 }
 0x39e   : > { %2700 = vpow2.f32 %v1166_v24  ;;  %v1148_v17 = vsub.f32 0.0, %v1093_v31  ;;  %v1130_v9 = vmul.f32 1.442695, %v1093_v31 }
 0x39f   : > { %v2691_v2 = vpop.eup %2690  ;;  %v1180_v11 = vmul.f32 1.442695, %v1149_v30 }
 0x3a0   : > { %1227 = vperm.xlu1 %2613, %v2689_v0   ;;  %1252 = vperm.xlu0 %2612, %v2691_v2   ;;  %v2693_v22 = vpop.eup %2692  ;;  %v1178_v25 = vmul.f32 1.442695, %v1148_v17  ;;  %v1122_v0 = vmul.f32 1.442695, %v1073_v6  ;;  %v1102_v2 = vmul.f32 1.442695, %v3258_v3 }
 0x3a1   : > { %2702 = vpow2.f32 %v1180_v11  ;;  %v1126_v11 = vmul.f32 1.442695, %v1083_v23  ;;  %v1110_v6 = vmul.f32 1.442695, %v3270_v15  ;;  %v1132_v15 = vmul.f32 1.442695, %v3288_v28 }
 0x3a2   : > { %2704 = vpow2.f32 %v1170_v5  ;;  %v1124_v5 = vmul.f32 1.442695, %v2323_v4  ;;  %v1120_v28 = vmul.f32 1.442695, %v3278_v27  ;;  %v1550_v27 = vld [vmem:[%s3564_s3 + $0x8] sm:$0xff] }
 0x3a3   : > { %v2695_v13 = vpop.eup %2694  ;;  %2706 = vpow2.f32 %v1104_v10 }
 0x3a4   : > { %1242 = vperm.xlu1 %2613, %v2693_v22   ;;  %1262 = vperm.xlu0 %2612, %v2695_v13   ;;  %v2697_v20 = vpop.eup %2696  ;;  %2708 = vpow2.f32 %v1174_v16  ;;  %v1128_v13 = vmul.f32 1.442695, %v3285_v14  ;;  %v1112_v16 = vmul.f32 1.442695, %v3267_v12  ;;  %v1116_v12 = vmul.f32 1.442695, %v3273_v18 }
 0x3a5   : > { %2710 = vpow2.f32 %v1108_v26  ;;  %v1114_v26 = vmul.f32 1.442695, %v3275_v19  ;;  %v1118_v19 = vmul.f32 1.442695, %v3281_v29  ;;  %v1549_v29 = vld [vmem:[%s3564_s3] sm:$0xff] }
 0x3a6   : > { %2712 = vpow2.f32 %v1178_v25 }
 0x3a7   : > { %v2699_v24 = vpop.eup %2698  ;;  %2714 = vpow2.f32 %v1122_v0 }
 0x3a8   : > { %1237 = vperm.xlu1 %2613, %v2697_v20   ;;  %1272 = vperm.xlu0 %2612, %v2699_v24   ;;  %v2701_v30 = vpop.eup %2700  ;;  %2716 = vpow2.f32 %v1102_v2 }
 0x3a9   : > { %2718 = vpow2.f32 %v1124_v5 }
 0x3aa   : > { %2720 = vpow2.f32 %v1106_v7  ;;  %v3312_v7 = vpack.c.bf16 %v1550_v27, %v1549_v29 }
 0x3ab   : > { %v2703_v1 = vpop.eup %2702  ;;  %2722 = vpow2.f32 %v1126_v11 }
 0x3ac   : > { %1247 = vperm.xlu1 %2613, %v2701_v30   ;;  %1282 = vperm.xlu0 %2612, %v2703_v1   ;;  %v2705_v22 = vpop.eup %2704  ;;  %2724 = vpow2.f32 %v1110_v6  ;;  %v1554_v6 = vld [vmem:[%s3564_s3 + $0x28] sm:$0xff] }
 0x3ad   : > { %v2707_v8 = vpop.eup %2706  ;;  %2726 = vpow2.f32 %v1128_v13  ;;  %2515 = vmatprep.subr.bf16.mxu0 %v3312_v7 }
 0x3ae   : > { %v2709_v20 = vpop.eup %2708  ;;  %2728 = vpow2.f32 %v1112_v16  ;;  %2517 = vmatpush3.bf16.msra.mxu0 %v3312_v7 }
 0x3af   : > { %v2711_v10 = vpop.eup %2710  ;;  %2730 = vpow2.f32 %v1130_v9 }
 0x3b0   : > { %1257 = vperm.xlu1 %2613, %v2705_v22   ;;  %1460 = vperm.xlu0 %2612, %v2707_v8   ;;  %v2713_v3 = vpop.eup %2712  ;;  %2732 = vpow2.f32 %v1114_v26  ;;  %v1551_v8 = vld [vmem:[%s3564_s3 + $0x10] sm:$0xff] }
 0x3b1   : > { %v2715_v4 = vpop.eup %2714  ;;  %2734 = vpow2.f32 %v1132_v15 }
 0x3b2   : > { %v2717_v17 = vpop.eup %2716  ;;  %2736 = vpow2.f32 %v1116_v12 }
 0x3b3   : > { %v2719_v23 = vpop.eup %2718  ;;  %2738 = vpow2.f32 %v1118_v19 }
 0x3b4   : > { %1267 = vperm.xlu1 %2613, %v2709_v20   ;;  %1470 = vperm.xlu0 %2612, %v2711_v10   ;;  %v2721_v14 = vpop.eup %2720  ;;  %2740 = vpow2.f32 %v1120_v28  ;;  %v1552_v20 = vld [vmem:[%s3564_s3 + $0x18] sm:$0xff]  ;;  %v1553_v10 = vld [vmem:[%s3564_s3 + $0x20] sm:$0xff] }
 0x3b5   : > { %v2723_v24 = vpop.eup %2722  ;;  %v3317_v11 = vpack.c.bf16 %v1552_v20, %v1551_v8  ;;  %v1197_v8 = vrot.slane %v3124_v34, 4 }
 0x3b6   : > { %v2725_v25 = vpop.eup %2724 }
 0x3b7   : > { %v2727_v31 = vpop.eup %2726  ;;  %2519 = vmatprep.subr.bf16.mxu0 %v3317_v11 }
 0x3b8   : > { %1505 = vperm.xlu0 %2612, %v2715_v4   ;;  %1277 = vperm.xlu1 %2613, %v2713_v3   ;;  %v2729_v30 = vpop.eup %2728  ;;  %v3328_v3 = vpack.c.bf16 %v1554_v6, %v1553_v10 }
 0x3b9   : > { %v2731_v0 = vpop.eup %2730  ;;  %2521 = vmatpush3.bf16.msra.mxu0 %v3317_v11 }
 0x3ba   : > { %v2733_v1 = vpop.eup %2732  ;;  %2523 = vmatprep.subr.bf16.mxu0 %v3328_v3 }
 0x3bb   : > { %v2735_v2 = vpop.eup %2734 }
 0x3bc   : > { %1510 = vperm.xlu0 %2612, %v2719_v23   ;;  %1455 = vperm.xlu1 %2613, %v2717_v17   ;;  %v2737_v18 = vpop.eup %2736 }
 0x3bd   : > { %v2739_v22 = vpop.eup %2738  ;;  %2525 = vmatpush3.bf16.msra.mxu0 %v3328_v3 }
 0x3be   : > { %v2741_v5 = vpop.eup %2740  ;;  %2527 = vmatprep.subr.bf16.mxu0 %v2526_v56 }
 0x3c0   : > { %1515 = vperm.xlu0 %2612, %v2723_v24   ;;  %1465 = vperm.xlu1 %2613, %v2721_v14  }
 0x3c1   : > { %2529 = vmatpush3.bf16.msra.mxu0 %v2526_v56 }
 0x3c4   : > { %1520 = vperm.xlu0 %2612, %v2727_v31   ;;  %1475 = vperm.xlu1 %2613, %v2725_v25  }
 0x3c8   : > { %1480 = vperm.xlu1 %2613, %v2729_v30   ;;  %1525 = vperm.xlu0 %2612, %v2731_v0  }
 0x3cc   : > { %1485 = vperm.xlu1 %2613, %v2733_v1   ;;  %1530 = vperm.xlu0 %2612, %v2735_v2  }
 0x3d0   : > { %1490 = vperm.xlu1 %2613, %v2737_v18  }
 0x3d4   : > { %1495 = vperm.xlu1 %2613, %v2739_v22  }
 0x3d8   : > { %1500 = vperm.xlu1 %2613, %v2741_v5  }
 0x40f   : > { %v1213_v13 = vpop.permute.xlu1 %1212 }
 0x410   : > { %v1286_v4 = vmul.f32 %v3030_v35, %v1213_v13  ;;  %v1208_v16 = vpop.permute.xlu0 %1207 }
 0x411   : > { %v1285_v9 = vmul.f32 %v1208_v16, %v3032_v36 }
 0x412   : > { %v1767_v17 = vsel %vm502_vm2, %v1286_v4, 0.0 }
 0x413   : > { %v2482_v23 = vpack.c.bf16 %v1286_v4, %v1285_v9  ;;  %v1766_v26 = vsel %vm502_vm2, %v1285_v9, 0.0  ;;  %v1223_v15 = vpop.permute.xlu1 %1222 }
 0x414   : > { %v1768_v14 = vadd.f32 %v1767_v17, %v1766_v26  ;;  %v1288_v12 = vmul.f32 %v3038_v37, %v1223_v15 }
 0x415   : > { %2483 = vmatprep.subr.bf16.mxu1 %v2482_v23 }
 0x416   : > { %2485 = vmatpush3.bf16.msra.mxu1 %v2482_v23  ;;  %v1771_v36 = vsel %vm502_vm2, %v1288_v12, 0.0 }
 0x417   : > { %v1218_v24 = vpop.permute.xlu1 %1217 }
 0x418   : > { %v1287_v25 = vmul.f32 %v1218_v24, %v3040_v38 }
 0x41a   : > { %v2486_v31 = vpack.c.bf16 %v1288_v12, %v1287_v25  ;;  %v1769_v35 = vsel %vm502_vm2, %v1287_v25, 0.0 }
 0x41b   : > { %v1770_v19 = vadd.f32 %v1769_v35, %v1768_v14  ;;  %v1233_v30 = vpop.permute.xlu1 %1232 }
 0x41c   : > { %2487 = vmatprep.subr.bf16.mxu1 %v2486_v31  ;;  %v1290_v1 = vmul.f32 %v3046_v39, %v1233_v30 }
 0x41d   : > { %2489 = vmatpush3.bf16.msra.mxu1 %v2486_v31  ;;  %v1772_v0 = vadd.f32 %v1771_v36, %v1770_v19 }
 0x41e   : > { %v1775_v29 = vsel %vm502_vm2, %v1290_v1, 0.0 }
 0x41f   : > { %v1228_v28 = vpop.permute.xlu1 %1227  ;;  %v1253_v38 = vpop.permute.xlu0 %1252 }
 0x420   : > { %v1289_v2 = vmul.f32 %v1228_v28, %v3048_v40  ;;  %v1198_v40 = vadd.f32 %v1197_v8, %v3124_v34  ;;  %v1294_v17 = vmul.f32 %v3062_v43, %v1253_v38 }
 0x422   : > { %v2490_v18 = vpack.c.bf16 %v1290_v1, %v1289_v2  ;;  %v1773_v37 = vsel %vm502_vm2, %v1289_v2, 0.0  ;;  %v1783_v25 = vsel %vm502_vm2, %v1294_v17, 0.0 }
 0x423   : > { %v1774_v22 = vadd.f32 %v1773_v37, %v1772_v0  ;;  %v1243_v5 = vpop.permute.xlu1 %1242  ;;  %v1263_v6 = vpop.permute.xlu0 %1262 }
 0x424   : > { %2491 = vmatprep.subr.bf16.mxu1 %v2490_v18  ;;  %v1292_v10 = vmul.f32 %v3054_v41, %v1243_v5  ;;  %v1199_v41 = vrot.slane %v1198_v40, 2  ;;  %v1296_v31 = vmul.f32 %v3070_v45, %v1263_v6 }
 0x425   : > { %2493 = vmatpush3.bf16.msra.mxu1 %v2490_v18  ;;  %v1776_v27 = vadd.f32 %v1775_v29, %v1774_v22 }
 0x426   : > { %v1779_v23 = vsel %vm502_vm2, %v1292_v10, 0.0  ;;  %v1787_v28 = vsel %vm502_vm2, %v1296_v31, 0.0 }
 0x427   : > { %v1238_v20 = vpop.permute.xlu1 %1237  ;;  %v1273_v24 = vpop.permute.xlu0 %1272 }
 0x428   : > { %v1291_v39 = vmul.f32 %v1238_v20, %v3056_v42  ;;  %v1298_v1 = vmul.f32 %v3078_v47, %v1273_v24 }
 0x42a   : > { %v2494_v13 = vpack.c.bf16 %v1292_v10, %v1291_v39  ;;  %v1777_v4 = vsel %vm502_vm2, %v1291_v39, 0.0  ;;  %v1791_v29 = vsel %vm502_vm2, %v1298_v1, 0.0 }
 0x42b   : > { %v1778_v16 = vadd.f32 %v1777_v4, %v1776_v27  ;;  %v1248_v9 = vpop.permute.xlu1 %1247  ;;  %v1283_v18 = vpop.permute.xlu0 %1282 }
 0x42c   : > { %v1293_v26 = vmul.f32 %v1248_v9, %v3064_v44  ;;  %2495 = vmatprep.subr.bf16.mxu1 %v2494_v13  ;;  %v1200_v44 = vadd.f32 %v1199_v41, %v1198_v40  ;;  %v1300_v27 = vmul.f32 %v3086_v49, %v1283_v18  ;;  %v3576_v49 = vmov 1.0  }
 0x42d   : > { %v1780_v15 = vadd.f32 %v1779_v23, %v1778_v16  ;;  %2497 = vmatpush3.bf16.msra.mxu1 %v2494_v13 }
 0x42e   : > { %v2498_v14 = vpack.c.bf16 %v1294_v17, %v1293_v26  ;;  %v1781_v42 = vsel %vm502_vm2, %v1293_v26, 0.0  ;;  %v1795_v6 = vsel %vm502_vm2, %v1300_v27, 0.0 }
 0x42f   : > { %v1782_v34 = vadd.f32 %v1781_v42, %v1780_v15  ;;  %v1258_v12 = vpop.permute.xlu1 %1257  ;;  %v1461_v59 = vpop.permute.xlu0 %1460 }
 0x430   : > { %v1295_v43 = vmul.f32 %v1258_v12, %v3072_v46  ;;  %2499 = vmatprep.subr.bf16.mxu1 %v2498_v14  ;;  %v1201_v46 = vrot.slane %v1200_v44, 1 }
 0x431   : > { %v1784_v35 = vadd.f32 %v1783_v25, %v1782_v34  ;;  %2501 = vmatpush3.bf16.msra.mxu1 %v2498_v14 }
 0x432   : > { %v2502_v19 = vpack.c.bf16 %v1296_v31, %v1295_v43  ;;  %v1785_v30 = vsel %vm502_vm2, %v1295_v43, 0.0 }
 0x433   : > { %v1786_v36 = vadd.f32 %v1785_v30, %v1784_v35  ;;  %v1268_v0 = vpop.permute.xlu1 %1267  ;;  %v1471_v62 = vpop.permute.xlu0 %1470 }
 0x434   : > { %v1297_v2 = vmul.f32 %v1268_v0, %v3080_v48  ;;  %2503 = vmatprep.subr.bf16.mxu1 %v2502_v19  ;;  %v1202_v48 = vadd.f32 %v1201_v46, %v1200_v44 }
 0x435   : > { %v1788_v45 = vadd.f32 %v1787_v28, %v1786_v36  ;;  %2505 = vmatpush3.bf16.msra.mxu1 %v2502_v19 }
 0x436   : > { %v2506_v37 = vpack.c.bf16 %v1298_v1, %v1297_v2  ;;  %v1789_v22 = vsel %vm502_vm2, %v1297_v2, 0.0  ;;  %v1203_v13 = vmul.f32 1.442695, %v1202_v48 }
 0x437   : > { %v1790_v38 = vadd.f32 %v1789_v22, %v1788_v45  ;;  %v1278_v5 = vpop.permute.xlu1 %1277  ;;  %v1506_v17 = vpop.permute.xlu0 %1505 }
 0x438   : > { %v1299_v8 = vmul.f32 %v1278_v5, %v3088_v50  ;;  %2507 = vmatprep.subr.bf16.mxu1 %v2506_v37  ;;  %2742 = vpow2.f32 %v1203_v13 }
 0x439   : > { %v1792_v47 = vadd.f32 %v1791_v29, %v1790_v38  ;;  %2509 = vmatpush3.bf16.msra.mxu1 %v2506_v37 }
 0x43a   : > { %v2510_v20 = vpack.c.bf16 %v1300_v27, %v1299_v8  ;;  %v1793_v10 = vsel %vm502_vm2, %v1299_v8, 0.0 }
 0x43b   : > { %v1794_v39 = vadd.f32 %v1793_v10, %v1792_v47  ;;  %v1456_v57 = vpop.permute.xlu1 %1455  ;;  %v1511_v31 = vpop.permute.xlu0 %1510 }
 0x43c   : > { %2511 = vmatprep.subr.bf16.mxu1 %v2510_v20 }
 0x43d   : > { %v1796_v40 = vadd.f32 %v1795_v6, %v1794_v39  ;;  %2513 = vmatpush3.bf16.msra.mxu1 %v2510_v20 }
 0x43e   : > { %2530 = vmatprep.subr.bf16.mxu1 %v3312_v7 }
 0x43f   : > { %v1797_v4 = vrot.slane %v1796_v40, 4  ;;  %v1466_v58 = vpop.permute.xlu1 %1465  ;;  %v1516_v2 = vpop.permute.xlu0 %1515 }
 0x440   : > { %2363 = vmatmul.mubr.msk.f32.vlgmr.msra.gmra.mrb[16].mxu1 %vm910_vm5, %v3576_v49  ;;  %vm1805_vm5 = vcmask 516096  }
 0x441   : > { %v1798_v50 = vadd.f32 %v1797_v4, %v1796_v40  ;;  %2365 = vmatprep.mubr.msk.f32.mxu1 %vm911_vm6, %v3576_v49  ;;  %2534 = vmatpush3.bf16.msra.mxu1 %v3312_v7 }
 0x442   : > { %2531 = vmatprep.subr.bf16.mxu1 %v3317_v11  ;;  %v2743_v7 = vpop.eup %2742 }
 0x443   : > { %v1799_v16 = vrot.slane %v1798_v50, 2  ;;  %v1476_v60 = vpop.permute.xlu1 %1475  ;;  %v1521_v48 = vpop.permute.xlu0 %1520 }
 0x444   : > { %2366 = vmatmul.mubr.msk.f32.gmra.mrb[18].mxu1 %vm912_vm7, %v3576_v49 }
 0x445   : > { %v1800_v9 = vadd.f32 %v1799_v16, %v1798_v50  ;;  %2368 = vmatprep.mubr.msk.f32.mxu1 %vm913_vm8, %v3576_v49  ;;  %2535 = vmatpush3.bf16.msra.mxu1 %v3317_v11  ;;  %v3441_v11 = vrot.slane %v1301_v33, %v1305_v21 }
 0x446   : > { %2532 = vmatprep.subr.bf16.mxu1 %v3328_v3 }
 0x447   : > { %v1801_v32 = vrot.slane %v1800_v9, 1  ;;  %v1481_v63 = vpop.permute.xlu1 %1480 }
 0x448   : > { %2369 = vmatmul.mubr.msk.f32.gmra.mrb[20].mxu1 %vm914_vm9, %v3576_v49 }
 0x449   : > { %2371 = vmatprep.mubr.msk.f32.mxu1 %vm915_vm10, %v3576_v49  ;;  %2536 = vmatpush3.bf16.msra.mxu1 %v3328_v3  ;;  %v1802_v51 = vadd.f32 %v1801_v32, %v1800_v9 }
 0x44a   : > { %2533 = vmatprep.subr.bf16.mxu1 %v2526_v56 }
 0x44b   : > { %v1803_v52 = vadd.f32 %v1802_v51, %v1301_v33  ;;  %v1486_v15 = vpop.permute.xlu1 %1485  ;;  %v1526_v33 = vpop.permute.xlu0 %1525 }
 0x44c   : > { %2372 = vmatmul.mubr.msk.f32.gmra.mrb[22].mxu1 %vm916_vm11, %v3576_v49 }
 0x44d   : > { %2374 = vmatprep.mubr.msk.f32.mxu1 %vm917_vm12, %v3576_v49  ;;  %v1804_v53 = vmul.f32 %v2743_v7, %v1803_v52  ;;  %2537 = vmatpush3.bf16.msra.mxu1 %v2526_v56 }
 0x44f   : > { %1806 = vst.msk [vmem:[#allocation2] sm:$0x1] %vm1805_vm5, %v1804_v53  ;;  %1807 = vst.msk [vmem:[%s2959_s29] sm:$0x1] %vm1805_vm5, %v1804_v53  ;;  %v1491_v43 = vpop.permute.xlu1 %1490 }
 0x450   : > { %2375 = vmatmul.mubr.msk.f32.gmra.mrb[24].mxu1 %vm918_vm13, %v3576_v49 }
 0x451   : > { %2377 = vmatprep.mubr.msk.f32.mxu1 %vm919_vm14, %v3576_v49 }
 0x453   : > { %v1496_v37 = vpop.permute.xlu1 %1495 }
 0x454   : > { %2378 = vmatmul.mubr.msk.f32.gmra.mrb[26].mxu1 %vm920_vm15, %v3576_v49 }
 0x455   : > { %2380 = vmatprep.mubr.msk.f32.mxu1 %vm921_vm0, %v3576_v49 }
 0x457   : > { %v1501_v20 = vpop.permute.xlu1 %1500 }
 0x458   : > { %2381 = vmatmul.mubr.msk.f32.gmra.mrb[28].mxu1 %vm922_vm3, %v3576_v49 }
 0x459   : > { %2383 = vmatprep.mubr.msk.f32.mxu1 %vm923_vm4, %v3576_v49 }
 0x45c   : > { %2384 = vmatmul.mubr.msk.f32.gmra.mrb[30].mxu1 %vm924_vm1, %v3576_v49 }
 0x513   : > { %v2364_v3 = vpop.f32.mrb[16].mxu1 }
 0x514   : > { %v1380_v23 = vadd.f32 %v2364_v3, %v3441_v11  ;;  %v1374_v26 = vpop.f32.mrb[17].mxu1 }
 0x515   : > { %v1375_v41 = vadd.f32 %v1374_v26, %v3441_v11 }
 0x516   : > { %v1534_v24 = vmul.f32 %v1461_v59, %v1380_v23 }
 0x517   : > { %v1533_v14 = vmul.f32 %v1456_v57, %v1375_v41  ;;  %v2367_v42 = vpop.f32.mrb[18].mxu1  ;;  %v1531_v57 = vpop.permute.xlu0 %1530 }
 0x518   : > { %v1390_v34 = vadd.f32 %v2367_v42, %v3441_v11  ;;  %v1384_v12 = vpop.f32.mrb[19].mxu1 }
 0x519   : > { %v1385_v25 = vadd.f32 %v1384_v12, %v3441_v11  ;;  %2402 = vmatprep.mubr.msk.f32.mxu0 %vm502_vm2, %v1533_v14 }
 0x51a   : > { %2403 = vmatmul.mubr.msk.f32.vlgmr.msra.gmra.mrb[32].mxu0 %vm502_vm2, %v1534_v24  ;;  %v1536_v19 = vmul.f32 %v1471_v62, %v1390_v34 }
 0x51b   : > { %v1535_v35 = vmul.f32 %v1466_v58, %v1385_v25  ;;  %v2370_v44 = vpop.f32.mrb[20].mxu1 }
 0x51c   : > { %v1400_v30 = vadd.f32 %v2370_v44, %v3441_v11  ;;  %v1394_v36 = vpop.f32.mrb[21].mxu1 }
 0x51d   : > { %v1395_v0 = vadd.f32 %v1394_v36, %v3441_v11  ;;  %2405 = vmatprep.mubr.msk.f32.mxu0 %vm502_vm2, %v1535_v35 }
 0x51e   : > { %2406 = vmatmul.mubr.msk.f32.gmra.mrb[34].mxu0 %vm502_vm2, %v1536_v19  ;;  %v1538_v18 = vmul.f32 %v1481_v63, %v1400_v30 }
 0x51f   : > { %v1537_v28 = vmul.f32 %v1476_v60, %v1395_v0  ;;  %v2373_v1 = vpop.f32.mrb[22].mxu1 }
 0x520   : > { %v1410_v45 = vadd.f32 %v2373_v1, %v3441_v11  ;;  %v1404_v46 = vpop.f32.mrb[23].mxu1 }
 0x521   : > { %v1405_v22 = vadd.f32 %v1404_v46, %v3441_v11  ;;  %2408 = vmatprep.mubr.msk.f32.mxu0 %vm502_vm2, %v1537_v28 }
 0x522   : > { %2409 = vmatmul.mubr.msk.f32.gmra.mrb[36].mxu0 %vm502_vm2, %v1538_v18  ;;  %v1540_v29 = vmul.f32 %v1491_v43, %v1410_v45 }
 0x523   : > { %v1539_v38 = vmul.f32 %v1486_v15, %v1405_v22  ;;  %v2376_v5 = vpop.f32.mrb[24].mxu1 }
 0x524   : > { %v1420_v27 = vadd.f32 %v2376_v5, %v3441_v11  ;;  %v1414_v8 = vpop.f32.mrb[25].mxu1 }
 0x525   : > { %v1415_v47 = vadd.f32 %v1414_v8, %v3441_v11  ;;  %2411 = vmatprep.mubr.msk.f32.mxu0 %vm502_vm2, %v1539_v38 }
 0x526   : > { %2412 = vmatmul.mubr.msk.f32.gmra.mrb[38].mxu0 %vm502_vm2, %v1540_v29  ;;  %v1542_v6 = vmul.f32 %v1501_v20, %v1420_v27 }
 0x527   : > { %v1541_v10 = vmul.f32 %v1496_v37, %v1415_v47  ;;  %v2379_v39 = vpop.f32.mrb[26].mxu1 }
 0x528   : > { %v1430_v40 = vadd.f32 %v2379_v39, %v3441_v11  ;;  %v1424_v13 = vpop.f32.mrb[27].mxu1 }
 0x529   : > { %v1425_v4 = vadd.f32 %v1424_v13, %v3441_v11  ;;  %2414 = vmatprep.mubr.msk.f32.mxu0 %vm502_vm2, %v1541_v10 }
 0x52a   : > { %2415 = vmatmul.mubr.msk.f32.gmra.mrb[40].mxu0 %vm502_vm2, %v1542_v6  ;;  %v1544_v16 = vmul.f32 %v1511_v31, %v1430_v40 }
 0x52b   : > { %v1543_v49 = vmul.f32 %v1506_v17, %v1425_v4  ;;  %v2382_v50 = vpop.f32.mrb[28].mxu1 }
 0x52c   : > { %v1440_v9 = vadd.f32 %v2382_v50, %v3441_v11  ;;  %v1434_v32 = vpop.f32.mrb[29].mxu1 }
 0x52d   : > { %v1435_v51 = vadd.f32 %v1434_v32, %v3441_v11  ;;  %2417 = vmatprep.mubr.msk.f32.mxu1 %vm502_vm2, %v1543_v49 }
 0x52e   : > { %2418 = vmatmul.mubr.msk.f32.vlgmr.msra.gmra.mrb[32].mxu1 %vm502_vm2, %v1544_v16  ;;  %v1546_v53 = vmul.f32 %v1521_v48, %v1440_v9 }
 0x52f   : > { %v1545_v52 = vmul.f32 %v1516_v2, %v1435_v51  ;;  %v2385_v7 = vpop.f32.mrb[30].mxu1 }
 0x530   : > { %v1450_v54 = vadd.f32 %v2385_v7, %v3441_v11  ;;  %v1444_v55 = vpop.f32.mrb[31].mxu1 }
 0x531   : > { %v1445_v56 = vadd.f32 %v1444_v55, %v3441_v11  ;;  %2420 = vmatprep.mubr.msk.f32.mxu1 %vm502_vm2, %v1545_v52 }
 0x532   : > { %2421 = vmatmul.mubr.msk.f32.gmra.mrb[34].mxu1 %vm502_vm2, %v1546_v53  ;;  %v1548_v59 = vmul.f32 %v1531_v57, %v1450_v54 }
 0x533   : > { %v1547_v58 = vmul.f32 %v1526_v33, %v1445_v56 }
 0x535   : > { %2423 = vmatprep.mubr.msk.f32.mxu1 %vm502_vm2, %v1547_v58 }
 0x536   : > { %2424 = vmatmul.mubr.msk.f32.gmra.mrb[36].mxu1 %vm502_vm2, %v1548_v59 }
 0x537   : > { %2757 = shalt.err (!%p2754_p8)
}
 0x538   : > { %s2758_s22 = scalar_lea.hbm %s3480_s13, 16  ;;  %s2762_s17 = scalar_lea.hbm %s3566_s5, 32 }
 0x539   : > { %p2759_p10 = scmp.ne.s32.totalorder %s3480_s13, %s2758_s22  ;;  %p2763_p13 = scmp.lt.u32.totalorder %s3480_s13, %s3566_s5 }
 0x53a   : > { %p2764_p0 = scmp.lt.u32.totalorder %s2762_s17, %s2758_s22  ;;  %p2766_p2 = scmp.lt.u32.totalorder %s2758_s22, %s3480_s13 }
 0x53b   : > { %p2760_p11 = pnand %p2759_p10, %p2923_p3 }
 0x53c   : > { %p2765_p1 = por %p2764_p0, %p2763_p13 }
 0x53d   : > { %p2761_p12 = pneg %p2760_p11 }
 0x53e   : > { %p2767_p4 = por %p2766_p2, %p2765_p1 }
 0x540   : > { %p2768_p5 = pnand %p2767_p4, %p2761_p12 }
 0x542   : > { %2771 = shalt.err (!%p2768_p5)
}
 0x543   : > { %2538 = dma.vmem_to_hbm [thread:$0]  (%p2923_p3), %s1835_s7, 16, %s3480_s13, %s1818_s14   ;;  %vm3578_vm1 = vcmask 261120  }
 0x544   : > { %vm3579_vm2 = vmmov %vm3578_vm1 }
 0x545   : > { %vm3580_vm6 = vmmov %vm3578_vm1 }
 0x546   : > { %vm3581_vm7 = vmmov %vm3578_vm1 }
 0x547   : > { %vm3582_vm8 = vmmov %vm3578_vm1 }
 0x548   : > { %vm3583_vm9 = vmmov %vm3578_vm1 }
 0x549   : > { %vm3584_vm10 = vmmov %vm3578_vm1 }
 0x54a   : > { %vm3585_vm11 = vmmov %vm3578_vm1 }
 0x54b   : > { %vm3586_vm12 = vmmov %vm3578_vm1 }
 0x54c   : > { %vm3587_vm13 = vmmov %vm3578_vm1 }
 0x54d   : > { %vm3588_vm14 = vmmov %vm3578_vm1 }
 0x54e   : > { %vm3589_vm15 = vmmov %vm3578_vm1 }
 0x54f   : > { %vm3590_vm0 = vmmov %vm3578_vm1 }
 0x550   : > { %vm3591_vm3 = vmmov %vm3590_vm0 }
 0x551   : > { %vm3592_vm4 = vmmov %vm3590_vm0 }
 0x552   : > { %vm3593_vm5 = vmmov %vm3590_vm0 }
 0x5ed   : > { %v2404_v60 = vpop.f32.mrb[32].mxu0 }
 0x5ee   : > { %1751 = vst.msk [vmem:[%s2955_s8 + $0x8] sm:$0xff] %vm3578_vm1, %v2404_v60  ;;  %v1671_v61 = vpop.f32.mrb[33].mxu0 }
 0x5ef   : > { %1750 = vst.msk [vmem:[%s2955_s8] sm:$0xff] %vm3579_vm2, %v1671_v61 }
 0x5f1   : > { %v2407_v21 = vpop.f32.mrb[34].mxu0 }
 0x5f2   : > { %1753 = vst.msk [vmem:[%s2955_s8 + $0x18] sm:$0xff] %vm3580_vm6, %v2407_v21  ;;  %v1681_v62 = vpop.f32.mrb[35].mxu0 }
 0x5f3   : > { %1752 = vst.msk [vmem:[%s2955_s8 + $0x10] sm:$0xff] %vm3581_vm7, %v1681_v62 }
 0x5f5   : > { %v2410_v63 = vpop.f32.mrb[36].mxu0 }
 0x5f6   : > { %1755 = vst.msk [vmem:[%s2955_s8 + $0x28] sm:$0xff] %vm3582_vm8, %v2410_v63  ;;  %v1691_v11 = vpop.f32.mrb[37].mxu0 }
 0x5f7   : > { %1754 = vst.msk [vmem:[%s2955_s8 + $0x20] sm:$0xff] %vm3583_vm9, %v1691_v11 }
 0x5f9   : > { %v2413_v3 = vpop.f32.mrb[38].mxu0 }
 0x5fa   : > { %1757 = vst.msk [vmem:[%s2955_s8 + $0x38] sm:$0xff] %vm3584_vm10, %v2413_v3  ;;  %v1701_v17 = vpop.f32.mrb[39].mxu0 }
 0x5fb   : > { %1756 = vst.msk [vmem:[%s2955_s8 + $0x30] sm:$0xff] %vm3585_vm11, %v1701_v17 }
 0x5fd   : > { %v2416_v23 = vpop.f32.mrb[40].mxu0 }
 0x5fe   : > { %1759 = vst.msk [vmem:[%s2955_s8 + $0x48] sm:$0xff] %vm3586_vm12, %v2416_v23  ;;  %v1711_v26 = vpop.f32.mrb[41].mxu0 }
 0x5ff   : > { %1758 = vst.msk [vmem:[%s2955_s8 + $0x40] sm:$0xff] %vm3587_vm13, %v1711_v26 }
 0x601   : > { %v2419_v15 = vpop.f32.mrb[32].mxu1 }
 0x602   : > { %1761 = vst.msk [vmem:[%s2955_s8 + $0x58] sm:$0xff] %vm3588_vm14, %v2419_v15  ;;  %v1721_v41 = vpop.f32.mrb[33].mxu1 }
 0x603   : > { %1760 = vst.msk [vmem:[%s2955_s8 + $0x50] sm:$0xff] %vm3589_vm15, %v1721_v41 }
 0x605   : > { %v2422_v14 = vpop.f32.mrb[34].mxu1 }
 0x606   : > { %1763 = vst.msk [vmem:[%s2955_s8 + $0x68] sm:$0xff] %vm3590_vm0, %v2422_v14  ;;  %v1731_v42 = vpop.f32.mrb[35].mxu1 }
 0x607   : > { %1762 = vst.msk [vmem:[%s2955_s8 + $0x60] sm:$0xff] %vm3591_vm3, %v1731_v42 }
 0x609   : > { %v2425_v24 = vpop.f32.mrb[36].mxu1 }
 0x60a   : > { %1765 = vst.msk [vmem:[%s2955_s8 + $0x78] sm:$0xff] %vm3592_vm4, %v2425_v24  ;;  %v1741_v34 = vpop.f32.mrb[37].mxu1 }
 0x60b   : > { %1764 = vst.msk [vmem:[%s2955_s8 + $0x70] sm:$0xff] %vm3593_vm5, %v1741_v34 }
 0x60c PF: > { %p2544_p3 = scmp.ge.s32.totalorder %s2838_s25, 2  ;;  %s1858_s30 = sand.u32 1, %s2810_s18  }
 0x60d   : > { %s1859_s7 = scalar_lea.sflag [#allocation4], %s1858_s30 }
 0x60e   : > { %p2541_p6 = pnand %p2544_p3, %p2933_p9 }
 0x610   : > { %2805 = dma.done.wait (!%p2541_p6), %s1859_s7, 16  }
 0x611   : > { %2807 = vsyncadd (!%p2541_p6), %s1859_s7, 4294967280  ;;  %s19_s25 = sadd.s32 1, %s2838_s25   ;;  %s3594_s8 = sld [smem:[#allocation6_spill]] }
 0x612   : > { %p16_p7 = scmp.ge.s32.totalorder %s19_s25, 6   ;;  %s3595_s18 = smov %s2814_s19 }
 0x613   : > { %s3596_s19 = smov %s2818_s20  ;;  %s3597_s20 = smov %s2941_s9 }
 0x614   : > { %s3598_s21 = smov %s2830_s23  ;;  %s3599_s22 = smov %s2834_s24 }
 0x615   : > { %s3600_s23 = smov %s3603_s28  ;;  %18 = sbr.rel (!%p16_p7) target bundleno = 5 (0x5), region = 87 }
 0x617   : > { %s3601_s24 = smov %s3594_s8 }
 0x61c   :  { %1863 = vsyncpa [#allocation4], 1 }
 0x61d   :  { %1865 = vsyncpa [#allocation4 + $0x1], 1 }

</bundles_post_ra>
